<compile_context>
chip_gen: v5e
topology: v5e:2x2
jax: 0.10.0
libtpu: 0.0.40
codegen_flags: <defaults>
</compile_context>

<pallas_src>
import jax
import jax.numpy as jnp
from jax.experimental import pallas as pl
from jax.experimental.pallas import tpu as pltpu


D_IN = 28 * 28        # 784
H1 = 256
H2 = 128
LATENT = 10
BATCH_TILE = 1024     # default batch tile (rows per grid step)


def _round_up(n, m):
    return ((n + m - 1) // m) * m


def _choose_tile(batch, requested):
    """Pick a batch tile: multiple of 8 rows, clamped for small batches, and split
    in two when possible so v7x's two TensorCores both get work."""
    b8 = _round_up(batch, 8)
    if b8 <= requested:
        if b8 % 16 == 0 and b8 >= 16:
            return b8 // 2          # two tiles -> both TCs busy on v7x
        return b8
    return requested


def _vae_kernel(
    x_ref, eps_ref,
    w1_ref, w2_ref, wmu_ref, wlv_ref, wd1_ref, wd2_ref, wd3_ref,
    b1_ref, b2_ref, bmu_ref, blv_ref, bd1_ref, bd2_ref, bd3_ref,
    recon_ref, mu_ref, logvar_ref,
):
    # ----- encoder: 784 -> 256 -> 128 (bf16 MXU, f32 accumulation) -----
    x = x_ref[...].astype(jnp.bfloat16)                                # (bt, 784)
    h = jnp.dot(x, w1_ref[...], preferred_element_type=jnp.float32)
    h = jnp.maximum(h + b1_ref[...], 0.0)
    h = jnp.dot(h.astype(jnp.bfloat16), w2_ref[...],
                preferred_element_type=jnp.float32)
    h = jnp.maximum(h + b2_ref[...], 0.0)
    hb = h.astype(jnp.bfloat16)                                        # (bt, 128)

    # ----- mu / logvar heads (natural width 10; MXU slack makes this free) -----
    mu = jnp.dot(hb, wmu_ref[...], preferred_element_type=jnp.float32) + bmu_ref[...]
    logvar = jnp.dot(hb, wlv_ref[...], preferred_element_type=jnp.float32) + blv_ref[...]

    # ----- reparameterize -----
    sigma = jnp.exp(0.5 * logvar)
    z = mu + eps_ref[...] * sigma                                      # (bt, 10) f32

    # ----- decoder: 10 -> 128 -> 256 -> 784 -----
    d = jnp.dot(z.astype(jnp.bfloat16), wd1_ref[...],
                preferred_element_type=jnp.float32)
    d = jnp.maximum(d + bd1_ref[...], 0.0)
    d = jnp.dot(d.astype(jnp.bfloat16), wd2_ref[...],
                preferred_element_type=jnp.float32)
    d = jnp.maximum(d + bd2_ref[...], 0.0)
    logits = jnp.dot(d.astype(jnp.bfloat16), wd3_ref[...],
                     preferred_element_type=jnp.float32)
    logits = logits + bd3_ref[...]

    # sigmoid via EUP exp + approximate reciprocal; clamp keeps exp finite.
    logits = jnp.clip(logits, -30.0, 30.0)
    recon = pl.reciprocal(1.0 + jnp.exp(-logits), approx=True)

    recon_ref[...] = recon.astype(jnp.bfloat16)
    mu_ref[...] = mu
    logvar_ref[...] = logvar


def vae_forward(x, eps, packed_params, *, batch_tile=BATCH_TILE):
    """x: (B, 784) f32, eps: (B, 10) f32
       -> (recon (B,784) bf16, mu (B,10) f32, logvar (B,10) f32)."""
    (w1, b1, w2, b2, wmu, bmu, wlv, blv, wd1, bd1, wd2, bd2, wd3, bd3) = packed_params

    B = x.shape[0]
    bt = _choose_tile(B, batch_tile)
    n_tiles = pl.cdiv(B, bt)
    B_pad = n_tiles * bt

    if B_pad != B:
        # pad only the batch axis (rare: B not a tile multiple); no lane padding.
        x_in = jnp.zeros((B_pad, D_IN), x.dtype).at[:B].set(x)
        eps_in = jnp.zeros((B_pad, LATENT), eps.dtype).at[:B].set(eps)
    else:
        x_in, eps_in = x, eps

    def row_spec(n):
        return pl.BlockSpec((bt, n), lambda i: (i, 0))

    def const_spec(arr):
        # constant block index -> weights/biases stay resident across grid steps
        return pl.BlockSpec(arr.shape, lambda i: (0, 0))

    recon_p, mu_p, logvar_p = pl.pallas_call(
        _vae_kernel,
        out_shape=[
            jax.ShapeDtypeStruct((B_pad, D_IN), jnp.bfloat16),
            jax.ShapeDtypeStruct((B_pad, LATENT), jnp.float32),
            jax.ShapeDtypeStruct((B_pad, LATENT), jnp.float32),
        ],
        grid_spec=pltpu.PrefetchScalarGridSpec(
            num_scalar_prefetch=0,
            grid=(n_tiles,),
            in_specs=[
                row_spec(D_IN),          # x
                row_spec(LATENT),        # eps
                const_spec(w1), const_spec(w2),
                const_spec(wmu), const_spec(wlv),
                const_spec(wd1), const_spec(wd2), const_spec(wd3),
                const_spec(b1), const_spec(b2),
                const_spec(bmu), const_spec(blv),
                const_spec(bd1), const_spec(bd2), const_spec(bd3),
            ],
            out_specs=[
                row_spec(D_IN),          # recon (bf16)
                row_spec(LATENT),        # mu
                row_spec(LATENT),        # logvar
            ],
        ),
        compiler_params=pltpu.CompilerParams(
            dimension_semantics=("parallel",),
            vmem_limit_bytes=40 * 1024 * 1024,
        ),
    )(x_in, eps_in,
      w1, w2, wmu, wlv, wd1, wd2, wd3,
      b1, b2, bmu, blv, bd1, bd2, bd3)

    if B_pad != B:
        recon_p = recon_p[:B]
        mu_p = mu_p[:B]
        logvar_p = logvar_p[:B]
    return recon_p, mu_p, logvar_p


def init_params(key):
    """Deterministic torch-equivalent init. Weights (in, out) f32; biases (1, out) f32."""
    dims = [
        (D_IN, H1),      # encoder[0]
        (H1, H2),        # encoder[2]
        (H2, LATENT),    # fc_mu
        (H2, LATENT),    # fc_logvar
        (LATENT, H2),    # decoder[0]
        (H2, H1),        # decoder[2]
        (H1, D_IN),      # decoder[4]
    ]
    params = []
    for (fan_in, fan_out) in dims:
        key, kw, kb = jax.random.split(key, 3)
        bound = 1.0 / jnp.sqrt(jnp.float32(fan_in))
        w = jax.random.uniform(kw, (fan_in, fan_out), jnp.float32, -bound, bound)
        b = jax.random.uniform(kb, (1, fan_out), jnp.float32, -bound, bound)
        params += [w, b]
    return tuple(params)


def pack_params(params):
    """One-time prep (outside the per-call path): weights -> bf16, biases stay f32."""
    out = []
    for i, p in enumerate(params):
        out.append(p.astype(jnp.bfloat16) if i % 2 == 0 else p)
    return tuple(out)


def reference_forward(x, eps, params):
    """Pure-JAX f32 reference matching the PyTorch module."""
    (w1, b1, w2, b2, wmu, bmu, wlv, blv, wd1, bd1, wd2, bd2, wd3, bd3) = params
    h = jax.nn.relu(x @ w1 + b1)
    h = jax.nn.relu(h @ w2 + b2)
    mu = h @ wmu + bmu
    logvar = h @ wlv + blv
    z = mu + eps * jnp.exp(0.5 * logvar)
    d = jax.nn.relu(z @ wd1 + bd1)
    d = jax.nn.relu(d @ wd2 + bd2)
    recon = jax.nn.sigmoid(d @ wd3 + bd3)
    return recon, mu, logvar


if __name__ == "__main__":
    key = jax.random.PRNGKey(0)
    kparam, kx, keps, kx2, keps2 = jax.random.split(key, 5)

    params = init_params(kparam)
    packed = pack_params(params)

    # --- primary small-shape check: B = 8, NCHW images flattened like x.view(-1, 784) ---
    B = 8
    x_img = jax.random.uniform(kx, (B, 1, 28, 28), jnp.float32)
    x = x_img.reshape(-1, D_IN)
    eps = jax.random.normal(keps, (B, LATENT), jnp.float32)

    recon, mu, logvar = vae_forward(x, eps, packed)
    jax.block_until_ready((recon, mu, logvar))

    r_ref, mu_ref, lv_ref = reference_forward(x, eps, params)
    assert recon.shape == (B, D_IN) and mu.shape == (B, LATENT) and logvar.shape == (B, LATENT)
    # bf16 matmuls / bf16 recon output + approximate reciprocal -> loose tolerance
    assert jnp.allclose(recon.astype(jnp.float32), r_ref, atol=5e-2), "recon mismatch"
    assert jnp.allclose(mu, mu_ref, atol=5e-2), "mu mismatch"
    assert jnp.allclose(logvar, lv_ref, atol=5e-2), "logvar mismatch"

    # --- secondary check: B = 30 exercises the multi-tile grid + batch-pad/slice path ---
    B2 = 30
    x2 = jax.random.uniform(kx2, (B2, D_IN), jnp.float32)
    eps2 = jax.random.normal(keps2, (B2, LATENT), jnp.float32)
    recon2, mu2, logvar2 = vae_forward(x2, eps2, packed)
    jax.block_until_ready((recon2, mu2, logvar2))
    r2_ref, mu2_ref, lv2_ref = reference_forward(x2, eps2, params)
    assert recon2.shape == (B2, D_IN)
    assert jnp.allclose(recon2.astype(jnp.float32), r2_ref, atol=5e-2), "recon2 mismatch"
    assert jnp.allclose(mu2, mu2_ref, atol=5e-2), "mu2 mismatch"
    assert jnp.allclose(logvar2, lv2_ref, atol=5e-2), "logvar2 mismatch"

    print("KERNEL_OK")
</pallas_src>

<mosaic_0001>
module attributes {stable_mosaic.version = 11 : i64} {
  func.func @_vae_kernel(%arg0: i32, %arg1: memref<8x784xf32, #tpu.memory_space<vmem>>, %arg2: memref<8x10xf32, #tpu.memory_space<vmem>>, %arg3: memref<784x256xbf16, #tpu.memory_space<vmem>>, %arg4: memref<256x128xbf16, #tpu.memory_space<vmem>>, %arg5: memref<128x10xbf16, #tpu.memory_space<vmem>>, %arg6: memref<128x10xbf16, #tpu.memory_space<vmem>>, %arg7: memref<10x128xbf16, #tpu.memory_space<vmem>>, %arg8: memref<128x256xbf16, #tpu.memory_space<vmem>>, %arg9: memref<256x784xbf16, #tpu.memory_space<vmem>>, %arg10: memref<1x256xf32, #tpu.memory_space<vmem>>, %arg11: memref<1x128xf32, #tpu.memory_space<vmem>>, %arg12: memref<1x10xf32, #tpu.memory_space<vmem>>, %arg13: memref<1x10xf32, #tpu.memory_space<vmem>>, %arg14: memref<1x128xf32, #tpu.memory_space<vmem>>, %arg15: memref<1x256xf32, #tpu.memory_space<vmem>>, %arg16: memref<1x784xf32, #tpu.memory_space<vmem>>, %arg17: memref<8x784xbf16, #tpu.memory_space<vmem>>, %arg18: memref<8x10xf32, #tpu.memory_space<vmem>>, %arg19: memref<8x10xf32, #tpu.memory_space<vmem>>) attributes {dimension_semantics = [#tpu.dimension_semantics<parallel>], iteration_bounds = array<i64: 1>, scalar_prefetch = 0 : i64, scratch_operands = 0 : i64, tpu.core_type = #tpu.core_type<tc>, window_params = [{transform_indices = @transform_0, window_bounds = array<i64: 8, 784>}, {transform_indices = @transform_1, window_bounds = array<i64: 8, 10>}, {pipeline_mode = #tpu.pipeline_mode<synchronous>, transform_indices = @transform_2, window_bounds = array<i64: 784, 256>}, {pipeline_mode = #tpu.pipeline_mode<synchronous>, transform_indices = @transform_3, window_bounds = array<i64: 256, 128>}, {pipeline_mode = #tpu.pipeline_mode<synchronous>, transform_indices = @transform_4, window_bounds = array<i64: 128, 10>}, {pipeline_mode = #tpu.pipeline_mode<synchronous>, transform_indices = @transform_5, window_bounds = array<i64: 128, 10>}, {pipeline_mode = #tpu.pipeline_mode<synchronous>, transform_indices = @transform_6, window_bounds = array<i64: 10, 128>}, {pipeline_mode = #tpu.pipeline_mode<synchronous>, transform_indices = @transform_7, window_bounds = array<i64: 128, 256>}, {pipeline_mode = #tpu.pipeline_mode<synchronous>, transform_indices = @transform_8, window_bounds = array<i64: 256, 784>}, {pipeline_mode = #tpu.pipeline_mode<synchronous>, transform_indices = @transform_9, window_bounds = array<i64: 1, 256>}, {pipeline_mode = #tpu.pipeline_mode<synchronous>, transform_indices = @transform_10, window_bounds = array<i64: 1, 128>}, {pipeline_mode = #tpu.pipeline_mode<synchronous>, transform_indices = @transform_11, window_bounds = array<i64: 1, 10>}, {pipeline_mode = #tpu.pipeline_mode<synchronous>, transform_indices = @transform_12, window_bounds = array<i64: 1, 10>}, {pipeline_mode = #tpu.pipeline_mode<synchronous>, transform_indices = @transform_13, window_bounds = array<i64: 1, 128>}, {pipeline_mode = #tpu.pipeline_mode<synchronous>, transform_indices = @transform_14, window_bounds = array<i64: 1, 256>}, {pipeline_mode = #tpu.pipeline_mode<synchronous>, transform_indices = @transform_15, window_bounds = array<i64: 1, 784>}, {transform_indices = @transform_16, window_bounds = array<i64: 8, 784>}, {transform_indices = @transform_17, window_bounds = array<i64: 8, 10>}, {transform_indices = @transform_18, window_bounds = array<i64: 8, 10>}]} {
    %c0 = arith.constant 0 : index
    %c0_0 = arith.constant 0 : index
    %0 = vector.load %arg1[%c0, %c0_0] : memref<8x784xf32, #tpu.memory_space<vmem>>, vector<8x784xf32>
    %1 = arith.truncf %0 : vector<8x784xf32> to vector<8x784xbf16>
    %c0_1 = arith.constant 0 : index
    %c0_2 = arith.constant 0 : index
    %2 = vector.load %arg3[%c0_1, %c0_2] : memref<784x256xbf16, #tpu.memory_space<vmem>>, vector<784x256xbf16>
    %cst = arith.constant dense<0.000000e+00> : vector<8x256xf32>
    %3 = tpu.matmul %1, %2, %cst {dimension_numbers = #tpu.dot_dimension_numbers<[1], [0], [0], [1], [0, 0, 1, 1], [], []>} : vector<8x784xbf16>, vector<784x256xbf16>, vector<8x256xf32> -> vector<8x256xf32>
    %c0_3 = arith.constant 0 : index
    %c0_4 = arith.constant 0 : index
    %4 = vector.load %arg10[%c0_3, %c0_4] : memref<1x256xf32, #tpu.memory_space<vmem>>, vector<1x256xf32>
    %5 = vector.broadcast %4 : vector<1x256xf32> to vector<8x256xf32>
    %6 = arith.addf %3, %5 : vector<8x256xf32>
    %cst_5 = arith.constant 0.000000e+00 : f32
    %7 = vector.broadcast %cst_5 : f32 to vector<8x256xf32>
    %8 = arith.maximumf %6, %7 : vector<8x256xf32>
    %9 = arith.truncf %8 : vector<8x256xf32> to vector<8x256xbf16>
    %c0_6 = arith.constant 0 : index
    %c0_7 = arith.constant 0 : index
    %10 = vector.load %arg4[%c0_6, %c0_7] : memref<256x128xbf16, #tpu.memory_space<vmem>>, vector<256x128xbf16>
    %cst_8 = arith.constant dense<0.000000e+00> : vector<8x128xf32>
    %11 = tpu.matmul %9, %10, %cst_8 {dimension_numbers = #tpu.dot_dimension_numbers<[1], [0], [0], [1], [0, 0, 1, 1], [], []>} : vector<8x256xbf16>, vector<256x128xbf16>, vector<8x128xf32> -> vector<8x128xf32>
    %c0_9 = arith.constant 0 : index
    %c0_10 = arith.constant 0 : index
    %12 = vector.load %arg11[%c0_9, %c0_10] : memref<1x128xf32, #tpu.memory_space<vmem>>, vector<1x128xf32>
    %13 = vector.broadcast %12 : vector<1x128xf32> to vector<8x128xf32>
    %14 = arith.addf %11, %13 : vector<8x128xf32>
    %cst_11 = arith.constant 0.000000e+00 : f32
    %15 = vector.broadcast %cst_11 : f32 to vector<8x128xf32>
    %16 = arith.maximumf %14, %15 : vector<8x128xf32>
    %17 = arith.truncf %16 : vector<8x128xf32> to vector<8x128xbf16>
    %c0_12 = arith.constant 0 : index
    %c0_13 = arith.constant 0 : index
    %18 = vector.load %arg5[%c0_12, %c0_13] : memref<128x10xbf16, #tpu.memory_space<vmem>>, vector<128x10xbf16>
    %cst_14 = arith.constant dense<0.000000e+00> : vector<8x10xf32>
    %19 = tpu.matmul %17, %18, %cst_14 {dimension_numbers = #tpu.dot_dimension_numbers<[1], [0], [0], [1], [0, 0, 1, 1], [], []>} : vector<8x128xbf16>, vector<128x10xbf16>, vector<8x10xf32> -> vector<8x10xf32>
    %c0_15 = arith.constant 0 : index
    %c0_16 = arith.constant 0 : index
    %20 = vector.load %arg12[%c0_15, %c0_16] : memref<1x10xf32, #tpu.memory_space<vmem>>, vector<1x10xf32>
    %21 = vector.broadcast %20 : vector<1x10xf32> to vector<8x10xf32>
    %22 = arith.addf %19, %21 : vector<8x10xf32>
    %c0_17 = arith.constant 0 : index
    %c0_18 = arith.constant 0 : index
    %23 = vector.load %arg6[%c0_17, %c0_18] : memref<128x10xbf16, #tpu.memory_space<vmem>>, vector<128x10xbf16>
    %cst_19 = arith.constant dense<0.000000e+00> : vector<8x10xf32>
    %24 = tpu.matmul %17, %23, %cst_19 {dimension_numbers = #tpu.dot_dimension_numbers<[1], [0], [0], [1], [0, 0, 1, 1], [], []>} : vector<8x128xbf16>, vector<128x10xbf16>, vector<8x10xf32> -> vector<8x10xf32>
    %c0_20 = arith.constant 0 : index
    %c0_21 = arith.constant 0 : index
    %25 = vector.load %arg13[%c0_20, %c0_21] : memref<1x10xf32, #tpu.memory_space<vmem>>, vector<1x10xf32>
    %26 = vector.broadcast %25 : vector<1x10xf32> to vector<8x10xf32>
    %27 = arith.addf %24, %26 : vector<8x10xf32>
    %cst_22 = arith.constant 5.000000e-01 : f32
    %28 = vector.broadcast %cst_22 : f32 to vector<8x10xf32>
    %29 = arith.mulf %28, %27 : vector<8x10xf32>
    %30 = math.exp %29 : vector<8x10xf32>
    %c0_23 = arith.constant 0 : index
    %c0_24 = arith.constant 0 : index
    %31 = vector.load %arg2[%c0_23, %c0_24] : memref<8x10xf32, #tpu.memory_space<vmem>>, vector<8x10xf32>
    %32 = arith.mulf %31, %30 : vector<8x10xf32>
    %33 = arith.addf %22, %32 : vector<8x10xf32>
    %34 = arith.truncf %33 : vector<8x10xf32> to vector<8x10xbf16>
    %c0_25 = arith.constant 0 : index
    %c0_26 = arith.constant 0 : index
    %35 = vector.load %arg7[%c0_25, %c0_26] : memref<10x128xbf16, #tpu.memory_space<vmem>>, vector<10x128xbf16>
    %cst_27 = arith.constant dense<0.000000e+00> : vector<8x128xf32>
    %36 = tpu.matmul %34, %35, %cst_27 {dimension_numbers = #tpu.dot_dimension_numbers<[1], [0], [0], [1], [0, 0, 1, 1], [], []>} : vector<8x10xbf16>, vector<10x128xbf16>, vector<8x128xf32> -> vector<8x128xf32>
    %c0_28 = arith.constant 0 : index
    %c0_29 = arith.constant 0 : index
    %37 = vector.load %arg14[%c0_28, %c0_29] : memref<1x128xf32, #tpu.memory_space<vmem>>, vector<1x128xf32>
    %38 = vector.broadcast %37 : vector<1x128xf32> to vector<8x128xf32>
    %39 = arith.addf %36, %38 : vector<8x128xf32>
    %cst_30 = arith.constant 0.000000e+00 : f32
    %40 = vector.broadcast %cst_30 : f32 to vector<8x128xf32>
    %41 = arith.maximumf %39, %40 : vector<8x128xf32>
    %42 = arith.truncf %41 : vector<8x128xf32> to vector<8x128xbf16>
    %c0_31 = arith.constant 0 : index
    %c0_32 = arith.constant 0 : index
    %43 = vector.load %arg8[%c0_31, %c0_32] : memref<128x256xbf16, #tpu.memory_space<vmem>>, vector<128x256xbf16>
    %cst_33 = arith.constant dense<0.000000e+00> : vector<8x256xf32>
    %44 = tpu.matmul %42, %43, %cst_33 {dimension_numbers = #tpu.dot_dimension_numbers<[1], [0], [0], [1], [0, 0, 1, 1], [], []>} : vector<8x128xbf16>, vector<128x256xbf16>, vector<8x256xf32> -> vector<8x256xf32>
    %c0_34 = arith.constant 0 : index
    %c0_35 = arith.constant 0 : index
    %45 = vector.load %arg15[%c0_34, %c0_35] : memref<1x256xf32, #tpu.memory_space<vmem>>, vector<1x256xf32>
    %46 = vector.broadcast %45 : vector<1x256xf32> to vector<8x256xf32>
    %47 = arith.addf %44, %46 : vector<8x256xf32>
    %cst_36 = arith.constant 0.000000e+00 : f32
    %48 = vector.broadcast %cst_36 : f32 to vector<8x256xf32>
    %49 = arith.maximumf %47, %48 : vector<8x256xf32>
    %50 = arith.truncf %49 : vector<8x256xf32> to vector<8x256xbf16>
    %c0_37 = arith.constant 0 : index
    %c0_38 = arith.constant 0 : index
    %51 = vector.load %arg9[%c0_37, %c0_38] : memref<256x784xbf16, #tpu.memory_space<vmem>>, vector<256x784xbf16>
    %cst_39 = arith.constant dense<0.000000e+00> : vector<8x784xf32>
    %52 = tpu.matmul %50, %51, %cst_39 {dimension_numbers = #tpu.dot_dimension_numbers<[1], [0], [0], [1], [0, 0, 1, 1], [], []>} : vector<8x256xbf16>, vector<256x784xbf16>, vector<8x784xf32> -> vector<8x784xf32>
    %c0_40 = arith.constant 0 : index
    %c0_41 = arith.constant 0 : index
    %53 = vector.load %arg16[%c0_40, %c0_41] : memref<1x784xf32, #tpu.memory_space<vmem>>, vector<1x784xf32>
    %54 = vector.broadcast %53 : vector<1x784xf32> to vector<8x784xf32>
    %55 = arith.addf %52, %54 : vector<8x784xf32>
    %cst_42 = arith.constant -3.000000e+01 : f32
    %cst_43 = arith.constant 3.000000e+01 : f32
    %56 = vector.broadcast %cst_42 : f32 to vector<8x784xf32>
    %57 = arith.maximumf %56, %55 : vector<8x784xf32>
    %58 = vector.broadcast %cst_43 : f32 to vector<8x784xf32>
    %59 = arith.minimumf %58, %57 : vector<8x784xf32>
    %cst_44 = arith.constant 0.000000e+00 : f32
    %60 = vector.broadcast %cst_44 : f32 to vector<8x784xf32>
    %61 = arith.subf %60, %59 : vector<8x784xf32>
    %62 = math.exp %61 : vector<8x784xf32>
    %cst_45 = arith.constant 1.000000e+00 : f32
    %63 = vector.broadcast %cst_45 : f32 to vector<8x784xf32>
    %64 = arith.addf %63, %62 : vector<8x784xf32>
    %65 = tpu.reciprocal %64 {approx = true} : vector<8x784xf32> -> vector<8x784xf32>
    %66 = arith.truncf %65 : vector<8x784xf32> to vector<8x784xbf16>
    %c0_46 = arith.constant 0 : index
    %c0_47 = arith.constant 0 : index
    %67 = vector.load %arg17[%c0_46, %c0_47] : memref<8x784xbf16, #tpu.memory_space<vmem>>, vector<8x784xbf16>
    tpu.vector_store %arg17[%c0_46, %c0_47], %66 {strides = array<i32>} : memref<8x784xbf16, #tpu.memory_space<vmem>>, vector<8x784xbf16>,
    %c0_48 = arith.constant 0 : index
    %c0_49 = arith.constant 0 : index
    %68 = vector.load %arg18[%c0_48, %c0_49] : memref<8x10xf32, #tpu.memory_space<vmem>>, vector<8x10xf32>
    tpu.vector_store %arg18[%c0_48, %c0_49], %22 {strides = array<i32>} : memref<8x10xf32, #tpu.memory_space<vmem>>, vector<8x10xf32>,
    %c0_50 = arith.constant 0 : index
    %c0_51 = arith.constant 0 : index
    %69 = vector.load %arg19[%c0_50, %c0_51] : memref<8x10xf32, #tpu.memory_space<vmem>>, vector<8x10xf32>
    tpu.vector_store %arg19[%c0_50, %c0_51], %27 {strides = array<i32>} : memref<8x10xf32, #tpu.memory_space<vmem>>, vector<8x10xf32>,
    return
  }
  func.func @transform_0(%arg0: i32) -> (i32, i32) {
    %c0_i32 = arith.constant 0 : i32
    %c0_i32_0 = arith.constant 0 : i32
    return %arg0, %c0_i32 : i32, i32
  }
  func.func @transform_1(%arg0: i32) -> (i32, i32) {
    %c0_i32 = arith.constant 0 : i32
    %c0_i32_0 = arith.constant 0 : i32
    return %arg0, %c0_i32 : i32, i32
  }
  func.func @transform_2(%arg0: i32) -> (i32, i32) {
    %c0_i32 = arith.constant 0 : i32
    %c0_i32_0 = arith.constant 0 : i32
    %c0_i32_1 = arith.constant 0 : i32
    return %c0_i32, %c0_i32_0 : i32, i32
  }
  func.func @transform_3(%arg0: i32) -> (i32, i32) {
    %c0_i32 = arith.constant 0 : i32
    %c0_i32_0 = arith.constant 0 : i32
    %c0_i32_1 = arith.constant 0 : i32
    return %c0_i32, %c0_i32_0 : i32, i32
  }
  func.func @transform_4(%arg0: i32) -> (i32, i32) {
    %c0_i32 = arith.constant 0 : i32
    %c0_i32_0 = arith.constant 0 : i32
    %c0_i32_1 = arith.constant 0 : i32
    return %c0_i32, %c0_i32_0 : i32, i32
  }
  func.func @transform_5(%arg0: i32) -> (i32, i32) {
    %c0_i32 = arith.constant 0 : i32
    %c0_i32_0 = arith.constant 0 : i32
    %c0_i32_1 = arith.constant 0 : i32
    return %c0_i32, %c0_i32_0 : i32, i32
  }
  func.func @transform_6(%arg0: i32) -> (i32, i32) {
    %c0_i32 = arith.constant 0 : i32
    %c0_i32_0 = arith.constant 0 : i32
    %c0_i32_1 = arith.constant 0 : i32
    return %c0_i32, %c0_i32_0 : i32, i32
  }
  func.func @transform_7(%arg0: i32) -> (i32, i32) {
    %c0_i32 = arith.constant 0 : i32
    %c0_i32_0 = arith.constant 0 : i32
    %c0_i32_1 = arith.constant 0 : i32
    return %c0_i32, %c0_i32_0 : i32, i32
  }
  func.func @transform_8(%arg0: i32) -> (i32, i32) {
    %c0_i32 = arith.constant 0 : i32
    %c0_i32_0 = arith.constant 0 : i32
    %c0_i32_1 = arith.constant 0 : i32
    return %c0_i32, %c0_i32_0 : i32, i32
  }
  func.func @transform_9(%arg0: i32) -> (i32, i32) {
    %c0_i32 = arith.constant 0 : i32
    %c0_i32_0 = arith.constant 0 : i32
    %c0_i32_1 = arith.constant 0 : i32
    return %c0_i32, %c0_i32_0 : i32, i32
  }
  func.func @transform_10(%arg0: i32) -> (i32, i32) {
    %c0_i32 = arith.constant 0 : i32
    %c0_i32_0 = arith.constant 0 : i32
    %c0_i32_1 = arith.constant 0 : i32
    return %c0_i32, %c0_i32_0 : i32, i32
  }
  func.func @transform_11(%arg0: i32) -> (i32, i32) {
    %c0_i32 = arith.constant 0 : i32
    %c0_i32_0 = arith.constant 0 : i32
    %c0_i32_1 = arith.constant 0 : i32
    return %c0_i32, %c0_i32_0 : i32, i32
  }
  func.func @transform_12(%arg0: i32) -> (i32, i32) {
    %c0_i32 = arith.constant 0 : i32
    %c0_i32_0 = arith.constant 0 : i32
    %c0_i32_1 = arith.constant 0 : i32
    return %c0_i32, %c0_i32_0 : i32, i32
  }
  func.func @transform_13(%arg0: i32) -> (i32, i32) {
    %c0_i32 = arith.constant 0 : i32
    %c0_i32_0 = arith.constant 0 : i32
    %c0_i32_1 = arith.constant 0 : i32
    return %c0_i32, %c0_i32_0 : i32, i32
  }
  func.func @transform_14(%arg0: i32) -> (i32, i32) {
    %c0_i32 = arith.constant 0 : i32
    %c0_i32_0 = arith.constant 0 : i32
    %c0_i32_1 = arith.constant 0 : i32
    return %c0_i32, %c0_i32_0 : i32, i32
  }
  func.func @transform_15(%arg0: i32) -> (i32, i32) {
    %c0_i32 = arith.constant 0 : i32
    %c0_i32_0 = arith.constant 0 : i32
    %c0_i32_1 = arith.constant 0 : i32
    return %c0_i32, %c0_i32_0 : i32, i32
  }
  func.func @transform_16(%arg0: i32) -> (i32, i32) {
    %c0_i32 = arith.constant 0 : i32
    %c0_i32_0 = arith.constant 0 : i32
    return %arg0, %c0_i32 : i32, i32
  }
  func.func @transform_17(%arg0: i32) -> (i32, i32) {
    %c0_i32 = arith.constant 0 : i32
    %c0_i32_0 = arith.constant 0 : i32
    return %arg0, %c0_i32 : i32, i32
  }
  func.func @transform_18(%arg0: i32) -> (i32, i32) {
    %c0_i32 = arith.constant 0 : i32
    %c0_i32_0 = arith.constant 0 : i32
    return %arg0, %c0_i32 : i32, i32
  }
}

</mosaic_0001>

<bundles_post_ra>
// kernel: tpu_custom_call.1
= control target key start
LH: loop header
LB: loop body
LE: loop exit
PB: predicated region body
PF: predicated region fallthrough
CT: control target
= control target key end

     0   :  { %s5449_s0 = inlined_call_operand.vmem [shape: f32[8,784], index: 0, kind: input, shape index: {}]   ;;  %s5450_s1 = inlined_call_operand.vmem [shape: f32[8,10], index: 1, kind: input, shape index: {}]   ;;  %s5451_s2 = inlined_call_operand.vmem [shape: bf16[784,256], index: 2, kind: input, shape index: {}]   ;;  %s5452_s3 = inlined_call_operand.vmem [shape: bf16[256,128], index: 3, kind: input, shape index: {}]   ;;  %s5453_s4 = inlined_call_operand.vmem [shape: bf16[128,10], index: 4, kind: input, shape index: {}]   ;;  %s5454_s5 = inlined_call_operand.vmem [shape: bf16[128,10], index: 5, kind: input, shape index: {}]   ;;  %s5455_s6 = inlined_call_operand.vmem [shape: bf16[10,128], index: 6, kind: input, shape index: {}]   ;;  %s5456_s7 = inlined_call_operand.vmem [shape: bf16[128,256], index: 7, kind: input, shape index: {}]   ;;  %s5457_s8 = inlined_call_operand.vmem [shape: bf16[256,784], index: 8, kind: input, shape index: {}]   ;;  %s5458_s9 = inlined_call_operand.vmem [shape: f32[1,256], index: 9, kind: input, shape index: {}]   ;;  %s5459_s10 = inlined_call_operand.vmem [shape: f32[1,128], index: 10, kind: input, shape index: {}]   ;;  %s5460_s11 = inlined_call_operand.vmem [shape: f32[1,10], index: 11, kind: input, shape index: {}]   ;;  %s5461_s12 = inlined_call_operand.vmem [shape: f32[1,10], index: 12, kind: input, shape index: {}]   ;;  %s5462_s13 = inlined_call_operand.vmem [shape: f32[1,128], index: 13, kind: input, shape index: {}]   ;;  %s5463_s14 = inlined_call_operand.vmem [shape: f32[1,256], index: 14, kind: input, shape index: {}]   ;;  %s5464_s15 = inlined_call_operand.vmem [shape: f32[1,784], index: 15, kind: input, shape index: {}]   ;;  %s5465_s16 = inlined_call_operand.hbm [shape: bf16[8,784], index: 16, kind: output, shape index: {0}]   ;;  %s5466_s17 = inlined_call_operand.hbm [shape: f32[8,10], index: 17, kind: output, shape index: {1}]   ;;  %s5467_s18 = inlined_call_operand.hbm [shape: f32[8,10], index: 18, kind: output, shape index: {2}]  }
   0x1   :  { %5470 = sst [smem:[#allocation9_spill]] %s5449_s0 }
   0x2   :  { %5471 = sst [smem:[#allocation10_spill]] %s5450_s1 }
   0x3   :  { %5472 = sst [smem:[#allocation11_spill]] %s5451_s2 }
   0x4   :  { %24 = vsyncpa [#allocation3], 0  ;;  %s5473_s29 = sld [smem:[#allocation11_spill]]  ;;  %vm667_vm0 = vcmask 130048  }
   0x5   :  { %s5474_s25 = sld [smem:[#allocation9_spill]] }
   0xa   :  { %v2419_v0 = vld [vmem:[%s5473_s29 + $0x70] sm:$0xf]  ;;  %v3422_v1 = vld [vmem:[%s5473_s29 + $0x74] sm:$0xf0]  ;;  %v2411_v11 = vld [vmem:[%s5473_s29 + $0x60] sm:$0xf] }
   0xb   :  { %v2547_v2 = vld [vmem:[%s5473_s29 + $0x170] sm:$0xf]  ;;  %v2420_v3 = vor.u32 %v3422_v1, %v2419_v0  ;;  %v3454_v4 = vld [vmem:[%s5473_s29 + $0x174] sm:$0xf0]  ;;  %v3420_v13 = vld [vmem:[%s5473_s29 + $0x64] sm:$0xf0] }
   0xc   :  { %v2611_v5 = vld [vmem:[%s5473_s29 + $0x1f0] sm:$0xf]  ;;  %v3470_v6 = vld [vmem:[%s5473_s29 + $0x1f4] sm:$0xf0]  ;;  %v2548_v7 = vor.u32 %v3454_v4, %v2547_v2  ;;  %v2539_v14 = vld [vmem:[%s5473_s29 + $0x160] sm:$0xf]  ;;  %v2412_v16 = vor.u32 %v3420_v13, %v2411_v11 }
   0xd   :  { %v2612_v8 = vor.u32 %v3470_v6, %v2611_v5  ;;  %v2483_v9 = vld [vmem:[%s5473_s29 + $0xf0] sm:$0xf]  ;;  %v3438_v10 = vld [vmem:[%s5473_s29 + $0xf4] sm:$0xf0]  ;;  %671 = vmatpush.bf16.msra.mxu0 %v2420_v3  ;;  %v3452_v15 = vld [vmem:[%s5473_s29 + $0x164] sm:$0xf0] }
   0xe   :  { %v2484_v12 = vor.u32 %v3438_v10, %v2483_v9  ;;  %697 = vmatpush.bf16.msra.mxu2 %v2548_v7  ;;  %v2540_v17 = vor.u32 %v3452_v15, %v2539_v14  ;;  %v2603_v18 = vld [vmem:[%s5473_s29 + $0x1e0] sm:$0xf]  ;;  %v3468_v19 = vld [vmem:[%s5473_s29 + $0x1e4] sm:$0xf0]  ;;  %v2403_v23 = vld [vmem:[%s5473_s29 + $0x50] sm:$0xf] }
   0xf   :  { %710 = vmatpush.bf16.msra.mxu3 %v2612_v8  ;;  %v2475_v20 = vld [vmem:[%s5473_s29 + $0xe0] sm:$0xf]  ;;  %v2604_v21 = vor.u32 %v3468_v19, %v2603_v18  ;;  %v3436_v22 = vld [vmem:[%s5473_s29 + $0xe4] sm:$0xf0]  ;;  %v3418_v24 = vld [vmem:[%s5473_s29 + $0x54] sm:$0xf0] }
  0x10   :  { %684 = vmatpush.bf16.msra.mxu1 %v2484_v12  ;;  %v2476_v25 = vor.u32 %v3436_v22, %v2475_v20  ;;  %v2531_v26 = vld [vmem:[%s5473_s29 + $0x150] sm:$0xf]  ;;  %v3450_v27 = vld [vmem:[%s5473_s29 + $0x154] sm:$0xf0]  ;;  %v2404_v29 = vor.u32 %v3418_v24, %v2403_v23  ;;  %v2395_v35 = vld [vmem:[%s5473_s29 + $0x40] sm:$0xf] }
  0x11   :  { %v2595_v28 = vld [vmem:[%s5473_s29 + $0x1d0] sm:$0xf]  ;;  %672 = vmatpush.bf16.msra.mxu0 %v2412_v16  ;;  %v3466_v30 = vld [vmem:[%s5473_s29 + $0x1d4] sm:$0xf0]  ;;  %v2532_v33 = vor.u32 %v3450_v27, %v2531_v26  ;;  %v3416_v36 = vld [vmem:[%s5473_s29 + $0x44] sm:$0xf0] }
  0x12   :  { %v2467_v31 = vld [vmem:[%s5473_s29 + $0xd0] sm:$0xf]  ;;  %v3434_v32 = vld [vmem:[%s5473_s29 + $0xd4] sm:$0xf0]  ;;  %698 = vmatpush.bf16.msra.mxu2 %v2540_v17  ;;  %v2596_v34 = vor.u32 %v3466_v30, %v2595_v28  ;;  %v2523_v37 = vld [vmem:[%s5473_s29 + $0x140] sm:$0xf]  ;;  %v2396_v44 = vor.u32 %v3416_v36, %v2395_v35 }
  0x13   :  { %711 = vmatpush.bf16.msra.mxu3 %v2604_v21  ;;  %v2468_v38 = vor.u32 %v3434_v32, %v2467_v31  ;;  %v3448_v39 = vld [vmem:[%s5473_s29 + $0x144] sm:$0xf0]  ;;  %v2587_v40 = vld [vmem:[%s5473_s29 + $0x1c0] sm:$0xf]  ;;  %v2387_v47 = vld [vmem:[%s5473_s29 + $0x30] sm:$0xf] }
  0x14   :  { %685 = vmatpush.bf16.msra.mxu1 %v2476_v25  ;;  %v3464_v41 = vld [vmem:[%s5473_s29 + $0x1c4] sm:$0xf0]  ;;  %v2459_v42 = vld [vmem:[%s5473_s29 + $0xc0] sm:$0xf]  ;;  %v2524_v45 = vor.u32 %v3448_v39, %v2523_v37  ;;  %v3414_v48 = vld [vmem:[%s5473_s29 + $0x34] sm:$0xf0] }
  0x15   :  { %v3432_v43 = vld [vmem:[%s5473_s29 + $0xc4] sm:$0xf0]  ;;  %673 = vmatpush.bf16.msra.mxu0 %v2404_v29  ;;  %v2588_v46 = vor.u32 %v3464_v41, %v2587_v40  ;;  %v2515_v49 = vld [vmem:[%s5473_s29 + $0x130] sm:$0xf]  ;;  %v3446_v51 = vld [vmem:[%s5473_s29 + $0x134] sm:$0xf0]  ;;  %v2388_v56 = vor.u32 %v3414_v48, %v2387_v47 }
  0x16   :  { %699 = vmatpush.bf16.msra.mxu2 %v2532_v33  ;;  %v2460_v50 = vor.u32 %v3432_v43, %v2459_v42  ;;  %v2579_v52 = vld [vmem:[%s5473_s29 + $0x1b0] sm:$0xf]  ;;  %v3462_v53 = vld [vmem:[%s5473_s29 + $0x1b4] sm:$0xf0]  ;;  %v2516_v57 = vor.u32 %v3446_v51, %v2515_v49  ;;  %v2379_v59 = vld [vmem:[%s5473_s29 + $0x20] sm:$0xf] }
  0x17   :  { %712 = vmatpush.bf16.msra.mxu3 %v2596_v34  ;;  %v2451_v54 = vld [vmem:[%s5473_s29 + $0xb0] sm:$0xf]  ;;  %v3430_v55 = vld [vmem:[%s5473_s29 + $0xb4] sm:$0xf0]  ;;  %v2580_v58 = vor.u32 %v3462_v53, %v2579_v52  ;;  %v3412_v60 = vld [vmem:[%s5473_s29 + $0x24] sm:$0xf0] }
  0x18   :  { %686 = vmatpush.bf16.msra.mxu1 %v2468_v38  ;;  %v2507_v61 = vld [vmem:[%s5473_s29 + $0x120] sm:$0xf]  ;;  %v2452_v62 = vor.u32 %v3430_v55, %v2451_v54  ;;  %v3444_v63 = vld [vmem:[%s5473_s29 + $0x124] sm:$0xf0]  ;;  %v2380_v4 = vor.u32 %v3412_v60, %v2379_v59  ;;  %v2371_v7 = vld [vmem:[%s5473_s29 + $0x10] sm:$0xf] }
  0x19   :  { %674 = vmatpush.bf16.msra.mxu0 %v2396_v44  ;;  %v2571_v0 = vld [vmem:[%s5473_s29 + $0x1a0] sm:$0xf]  ;;  %v3460_v1 = vld [vmem:[%s5473_s29 + $0x1a4] sm:$0xf0]  ;;  %v2508_v5 = vor.u32 %v3444_v63, %v2507_v61  ;;  %v3410_v8 = vld [vmem:[%s5473_s29 + $0x14] sm:$0xf0] }
  0x1a   :  { %700 = vmatpush.bf16.msra.mxu2 %v2524_v45  ;;  %v2443_v2 = vld [vmem:[%s5473_s29 + $0xa0] sm:$0xf]  ;;  %v3428_v3 = vld [vmem:[%s5473_s29 + $0xa4] sm:$0xf0]  ;;  %v2572_v6 = vor.u32 %v3460_v1, %v2571_v0  ;;  %v2499_v9 = vld [vmem:[%s5473_s29 + $0x110] sm:$0xf]  ;;  %v2372_v16 = vor.u32 %v3410_v8, %v2371_v7 }
  0x1b   :  { %713 = vmatpush.bf16.msra.mxu3 %v2588_v46  ;;  %v2444_v10 = vor.u32 %v3428_v3, %v2443_v2  ;;  %v3442_v11 = vld [vmem:[%s5473_s29 + $0x114] sm:$0xf0]  ;;  %v2563_v12 = vld [vmem:[%s5473_s29 + $0x190] sm:$0xf]  ;;  %v2363_v17 = vld [vmem:[%s5473_s29] sm:$0xf] }
  0x1c   :  { %687 = vmatpush.bf16.msra.mxu1 %v2460_v50  ;;  %v3458_v13 = vld [vmem:[%s5473_s29 + $0x194] sm:$0xf0]  ;;  %v2435_v14 = vld [vmem:[%s5473_s29 + $0x90] sm:$0xf]  ;;  %v3408_v18 = vld [vmem:[%s5473_s29 + $0x4] sm:$0xf0]  ;;  %v2500_v20 = vor.u32 %v3442_v11, %v2499_v9 }
  0x1d   :  { %675 = vmatpush.bf16.msra.mxu0 %v2388_v56  ;;  %v3426_v15 = vld [vmem:[%s5473_s29 + $0x94] sm:$0xf0]  ;;  %v2491_v19 = vld [vmem:[%s5473_s29 + $0x100] sm:$0xf]  ;;  %v2564_v21 = vor.u32 %v3458_v13, %v2563_v12  ;;  %v3440_v22 = vld [vmem:[%s5473_s29 + $0x104] sm:$0xf0]  ;;  %v2364_v32 = vor.u32 %v3408_v18, %v2363_v17 }
  0x1e   :  { %701 = vmatpush.bf16.msra.mxu2 %v2516_v57  ;;  %v2555_v23 = vld [vmem:[%s5473_s29 + $0x180] sm:$0xf]  ;;  %v3456_v24 = vld [vmem:[%s5473_s29 + $0x184] sm:$0xf0]  ;;  %v2436_v25 = vor.u32 %v3426_v15, %v2435_v14  ;;  %v2675_v26 = vld [vmem:[%s5473_s29 + $0x270] sm:$0xf]  ;;  %v2492_v36 = vor.u32 %v3440_v22, %v2491_v19 }
  0x1f   :  { %714 = vmatpush.bf16.msra.mxu3 %v2580_v58  ;;  %v3486_v27 = vld [vmem:[%s5473_s29 + $0x274] sm:$0xf0]  ;;  %v3421_v28 = vld [vmem:[%s5473_s29 + $0x74] sm:$0xf]  ;;  %v2421_v29 = vld [vmem:[%s5473_s29 + $0x78] sm:$0xf0]  ;;  %v2556_v37 = vor.u32 %v3456_v24, %v2555_v23 }
  0x20   :  { %688 = vmatpush.bf16.msra.mxu1 %v2452_v62  ;;  %v2427_v30 = vld [vmem:[%s5473_s29 + $0x80] sm:$0xf]  ;;  %v3424_v31 = vld [vmem:[%s5473_s29 + $0x84] sm:$0xf0]  ;;  %v61_v33 = vld [vmem:[%s5474_s25 + $0x10] sm:$0xff]  ;;  %v2676_v41 = vor.u32 %v3486_v27, %v2675_v26  ;;  %v2424_v42 = vor.u32 %v3421_v28, %v2421_v29 }
  0x21   :  { %676 = vmatpush.bf16.msra.mxu0 %v2380_v4  ;;  %v2747_v34 = vld [vmem:[%s5473_s29 + $0x300] sm:$0xf]  ;;  %v3504_v35 = vld [vmem:[%s5473_s29 + $0x304] sm:$0xf0]  ;;  %v2739_v38 = vld [vmem:[%s5473_s29 + $0x2f0] sm:$0xf]  ;;  %v2428_v46 = vor.u32 %v3424_v31, %v2427_v30  ;;  %v4117_v51 = vpack.c.bf16 %v61_v33, %v61_v33 }
  0x22   :  { %702 = vmatpush.bf16.msra.mxu2 %v2508_v5  ;;  %v3502_v39 = vld [vmem:[%s5473_s29 + $0x2f4] sm:$0xf0]  ;;  %v3437_v40 = vld [vmem:[%s5473_s29 + $0xf4] sm:$0xf]  ;;  %v2485_v43 = vld [vmem:[%s5473_s29 + $0xf8] sm:$0xf0]  ;;  %v2748_v47 = vor.u32 %v3504_v35, %v2747_v34 }
  0x23   :  { %715 = vmatpush.bf16.msra.mxu3 %v2572_v6  ;;  %v2667_v44 = vld [vmem:[%s5473_s29 + $0x260] sm:$0xf]  ;;  %v3484_v48 = vld [vmem:[%s5473_s29 + $0x264] sm:$0xf0]  ;;  %v3419_v49 = vld [vmem:[%s5473_s29 + $0x64] sm:$0xf]  ;;  %v2740_v52 = vor.u32 %v3502_v39, %v2739_v38  ;;  %v2488_v55 = vor.u32 %v3437_v40, %v2485_v43 }
  0x24   :  { %689 = vmatpush.bf16.msra.mxu1 %v2444_v10  ;;  %v59_v45 = vld [vmem:[%s5474_s25] sm:$0xff]  ;;  %v2413_v50 = vld [vmem:[%s5473_s29 + $0x68] sm:$0xf0]  ;;  %v62_v53 = vld [vmem:[%s5474_s25 + $0x18] sm:$0xff]  ;;  %v2668_v59 = vor.u32 %v3484_v48, %v2667_v44 }
  0x25   :  { %677 = vmatpush.bf16.msra.mxu0 %v2372_v16  ;;  %v60_v54 = vld [vmem:[%s5474_s25 + $0x8] sm:$0xff]  ;;  %v2731_v56 = vld [vmem:[%s5473_s29 + $0x2e0] sm:$0xf]  ;;  %v4131_v58 = vpack.c.bf16 %v59_v45, %v59_v45  ;;  %v2416_v60 = vor.u32 %v3419_v49, %v2413_v50  ;;  %v3435_v61 = vld [vmem:[%s5473_s29 + $0xe4] sm:$0xf]  ;;  %v4151_v3 = vpack.c.bf16 %v62_v53, %v62_v53 }
  0x26   :  { %703 = vmatpush.bf16.msra.mxu2 %v2500_v20  ;;  %v3500_v57 = vld [vmem:[%s5473_s29 + $0x2e4] sm:$0xf0]  ;;  %v2477_v62 = vld [vmem:[%s5473_s29 + $0xe8] sm:$0xf0]  ;;  %v2659_v63 = vld [vmem:[%s5473_s29 + $0x250] sm:$0xf]  ;;  %v4153_v4 = vpack.c.bf16 %v60_v54, %v60_v54 }
  0x27   :  { %716 = vmatpush.bf16.msra.mxu3 %v2564_v21  ;;  %v3482_v0 = vld [vmem:[%s5473_s29 + $0x254] sm:$0xf0]  ;;  %v3417_v1 = vld [vmem:[%s5473_s29 + $0x54] sm:$0xf]  ;;  %v2405_v2 = vld [vmem:[%s5473_s29 + $0x58] sm:$0xf0]  ;;  %v2732_v5 = vor.u32 %v3500_v57, %v2731_v56  ;;  %v2480_v6 = vor.u32 %v3435_v61, %v2477_v62 }
  0x28   :  { %690 = vmatpush.bf16.msra.mxu1 %v2436_v25  ;;  %v2723_v7 = vld [vmem:[%s5473_s29 + $0x2d0] sm:$0xf]  ;;  %v3498_v8 = vld [vmem:[%s5473_s29 + $0x2d4] sm:$0xf0]  ;;  %v2660_v9 = vor.u32 %v3482_v0, %v2659_v63  ;;  %v2408_v10 = vor.u32 %v3417_v1, %v2405_v2  ;;  %v3433_v11 = vld [vmem:[%s5473_s29 + $0xd4] sm:$0xf] }
  0x29   :  { %678 = vmatpush.bf16.msra.mxu0 %v2364_v32  ;;  %v2469_v12 = vld [vmem:[%s5473_s29 + $0xd8] sm:$0xf0]  ;;  %v2651_v13 = vld [vmem:[%s5473_s29 + $0x240] sm:$0xf]  ;;  %v3480_v14 = vld [vmem:[%s5473_s29 + $0x244] sm:$0xf0]  ;;  %v2724_v17 = vor.u32 %v3498_v8, %v2723_v7 }
  0x2a   :  { %704 = vmatpush.bf16.msra.mxu2 %v2492_v36  ;;  %v3415_v15 = vld [vmem:[%s5473_s29 + $0x44] sm:$0xf]  ;;  %v2397_v16 = vld [vmem:[%s5473_s29 + $0x48] sm:$0xf0]  ;;  %v2472_v18 = vor.u32 %v3433_v11, %v2469_v12  ;;  %v2715_v19 = vld [vmem:[%s5473_s29 + $0x2c0] sm:$0xf]  ;;  %v2652_v21 = vor.u32 %v3480_v14, %v2651_v13 }
  0x2b   :  { %717 = vmatpush.bf16.msra.mxu3 %v2556_v37  ;;  %v3496_v20 = vld [vmem:[%s5473_s29 + $0x2c4] sm:$0xf0]  ;;  %v2400_v22 = vor.u32 %v3415_v15, %v2397_v16  ;;  %v3431_v23 = vld [vmem:[%s5473_s29 + $0xc4] sm:$0xf]  ;;  %v2461_v24 = vld [vmem:[%s5473_s29 + $0xc8] sm:$0xf0] }
  0x2c   :  { %691 = vmatpush.bf16.msra.mxu1 %v2428_v46  ;;  %679 = vmatmul.bf16.vlgmr.msra.gmra.mxu0 %v4131_v58  ;;  %v2643_v25 = vld [vmem:[%s5473_s29 + $0x230] sm:$0xf]  ;;  %v3478_v26 = vld [vmem:[%s5473_s29 + $0x234] sm:$0xf0]  ;;  %v3413_v27 = vld [vmem:[%s5473_s29 + $0x34] sm:$0xf]  ;;  %v2716_v29 = vor.u32 %v3496_v20, %v2715_v19  ;;  %v2464_v30 = vor.u32 %v3431_v23, %v2461_v24 }
  0x2d   :  { %723 = vmatpush.bf16.msrb.mxu0 %v2676_v41  ;;  %705 = vmatmul.bf16.vlgmr.msra.gmra.mxu2 %v4117_v51  ;;  %v2389_v28 = vld [vmem:[%s5473_s29 + $0x38] sm:$0xf0]  ;;  %v2707_v31 = vld [vmem:[%s5473_s29 + $0x2b0] sm:$0xf]  ;;  %v3494_v32 = vld [vmem:[%s5473_s29 + $0x2b4] sm:$0xf0]  ;;  %v2644_v34 = vor.u32 %v3478_v26, %v2643_v25 }
  0x2e   :  { %756 = vmatpush.bf16.msrb.mxu2 %v2748_v47  ;;  %718 = vmatmul.bf16.vlgmr.msra.gmra.mxu3 %v4151_v3  ;;  %v65_v33 = vld [vmem:[%s5474_s25 + $0x30] sm:$0xff]  ;;  %v2392_v35 = vor.u32 %v3413_v27, %v2389_v28  ;;  %v2453_v37 = vld [vmem:[%s5473_s29 + $0xb8] sm:$0xf0]  ;;  %v2635_v38 = vld [vmem:[%s5473_s29 + $0x220] sm:$0xf] }
  0x2f   :  { %762 = vmatpush.bf16.msrb.mxu3 %v2424_v42  ;;  %692 = vmatmul.bf16.vlgmr.msra.gmra.mxu1 %v4153_v4  ;;  %v3429_v36 = vld [vmem:[%s5473_s29 + $0xb4] sm:$0xf]  ;;  %v3476_v39 = vld [vmem:[%s5473_s29 + $0x224] sm:$0xf0]  ;;  %v3411_v40 = vld [vmem:[%s5473_s29 + $0x24] sm:$0xf]  ;;  %v2708_v42 = vor.u32 %v3494_v32, %v2707_v31  ;;  %v4234_v43 = vpack.c.bf16 %v65_v33, %v65_v33 }
  0x30   :  { %736 = vmatpush.bf16.msrb.mxu1 %v2740_v52  ;;  %v2381_v41 = vld [vmem:[%s5473_s29 + $0x28] sm:$0xf0]  ;;  %v2456_v44 = vor.u32 %v3429_v36, %v2453_v37  ;;  %v2699_v45 = vld [vmem:[%s5473_s29 + $0x2a0] sm:$0xf]  ;;  %v3492_v46 = vld [vmem:[%s5473_s29 + $0x2a4] sm:$0xf0]  ;;  %v2636_v47 = vor.u32 %v3476_v39, %v2635_v38 }
  0x31   :  { %724 = vmatpush.bf16.msrb.mxu0 %v2668_v59  ;;  %v2384_v48 = vor.u32 %v3411_v40, %v2381_v41  ;;  %v3427_v49 = vld [vmem:[%s5473_s29 + $0xa4] sm:$0xf]  ;;  %v2445_v50 = vld [vmem:[%s5473_s29 + $0xa8] sm:$0xf0]  ;;  %v2627_v52 = vld [vmem:[%s5473_s29 + $0x210] sm:$0xf]  ;;  %v2700_v56 = vor.u32 %v3492_v46, %v2699_v45 }
  0x32   :  { %775 = vmatpush.bf16.msra.mxu2 %v2488_v55  ;;  %v3474_v53 = vld [vmem:[%s5473_s29 + $0x214] sm:$0xf0]  ;;  %v3409_v54 = vld [vmem:[%s5473_s29 + $0x14] sm:$0xf]  ;;  %v2373_v55 = vld [vmem:[%s5473_s29 + $0x18] sm:$0xf0]  ;;  %v2448_v57 = vor.u32 %v3427_v49, %v2445_v50 }
  0x33   :  { %763 = vmatpush.bf16.msrb.mxu3 %v2416_v60  ;;  %v2691_v59 = vld [vmem:[%s5473_s29 + $0x290] sm:$0xf]  ;;  %v3490_v60 = vld [vmem:[%s5473_s29 + $0x294] sm:$0xf0]  ;;  %v3425_v61 = vld [vmem:[%s5473_s29 + $0x94] sm:$0xf]  ;;  %v2628_v62 = vor.u32 %v3474_v53, %v2627_v52  ;;  %v2376_v63 = vor.u32 %v3409_v54, %v2373_v55 }
  0x34   :  { %737 = vmatpush.bf16.msrb.mxu1 %v2732_v5  ;;  %v2437_v0 = vld [vmem:[%s5473_s29 + $0x98] sm:$0xf0]  ;;  %v2619_v1 = vld [vmem:[%s5473_s29 + $0x200] sm:$0xf]  ;;  %v3472_v2 = vld [vmem:[%s5473_s29 + $0x204] sm:$0xf0]  ;;  %v2692_v8 = vor.u32 %v3490_v60, %v2691_v59 }
  0x35   :  { %725 = vmatpush.bf16.msrb.mxu0 %v2660_v9  ;;  %v3407_v5 = vld [vmem:[%s5473_s29 + $0x4] sm:$0xf]  ;;  %v3453_v7 = vld [vmem:[%s5473_s29 + $0x174] sm:$0xf]  ;;  %v2549_v9 = vld [vmem:[%s5473_s29 + $0x178] sm:$0xf0]  ;;  %v2440_v12 = vor.u32 %v3425_v61, %v2437_v0  ;;  %v2620_v16 = vor.u32 %v3472_v2, %v2619_v1 }
  0x36   :  { %776 = vmatpush.bf16.msra.mxu2 %v2480_v6  ;;  %v2365_v6 = vld [vmem:[%s5473_s29 + $0x8] sm:$0xf0]  ;;  %v2677_v11 = vld [vmem:[%s5473_s29 + $0x278] sm:$0xf0]  ;;  %v2683_v13 = vld [vmem:[%s5473_s29 + $0x280] sm:$0xf] }
  0x37   :  { %764 = vmatpush.bf16.msrb.mxu3 %v2408_v10  ;;  %v3485_v10 = vld [vmem:[%s5473_s29 + $0x274] sm:$0xf]  ;;  %v3488_v14 = vld [vmem:[%s5473_s29 + $0x284] sm:$0xf0]  ;;  %v63_v15 = vld [vmem:[%s5474_s25 + $0x20] sm:$0xff] }
  0x38   :  { %738 = vmatpush.bf16.msrb.mxu1 %v2724_v17  ;;  %v2368_v17 = vor.u32 %v3407_v5, %v2365_v6  ;;  %v2429_v19 = vld [vmem:[%s5473_s29 + $0x88] sm:$0xf0]  ;;  %v3469_v20 = vld [vmem:[%s5473_s29 + $0x1f4] sm:$0xf]  ;;  %v2613_v23 = vld [vmem:[%s5473_s29 + $0x1f8] sm:$0xf0]  ;;  %v2684_v26 = vor.u32 %v3488_v14, %v2683_v13 }
  0x39   :  { %726 = vmatpush.bf16.msrb.mxu0 %v2652_v21  ;;  %v2552_v21 = vor.u32 %v3453_v7, %v2549_v9  ;;  %v3501_v24 = vld [vmem:[%s5473_s29 + $0x2f4] sm:$0xf]  ;;  %v2741_v25 = vld [vmem:[%s5473_s29 + $0x2f8] sm:$0xf0]  ;;  %v64_v27 = vld [vmem:[%s5474_s25 + $0x28] sm:$0xff] }
  0x3a   :  { %777 = vmatpush.bf16.msra.mxu2 %v2472_v18  ;;  %v3423_v18 = vld [vmem:[%s5473_s29 + $0x84] sm:$0xf]  ;;  %v2669_v33 = vld [vmem:[%s5473_s29 + $0x268] sm:$0xf0]  ;;  %v4345_v37 = vpack.c.bf16 %v64_v27, %v64_v27  ;;  %v2533_v45 = vld [vmem:[%s5473_s29 + $0x158] sm:$0xf0] }
  0x3b   :  { %765 = vmatpush.bf16.msrb.mxu3 %v2400_v22  ;;  %v2680_v22 = vor.u32 %v3485_v10, %v2677_v11  ;;  %v3451_v28 = vld [vmem:[%s5473_s29 + $0x164] sm:$0xf]  ;;  %v2432_v31 = vor.u32 %v3423_v18, %v2429_v19  ;;  %v2605_v39 = vld [vmem:[%s5473_s29 + $0x1e8] sm:$0xf0]  ;;  %v3481_v46 = vld [vmem:[%s5473_s29 + $0x254] sm:$0xf] }
  0x3c   :  { %739 = vmatpush.bf16.msrb.mxu1 %v2716_v29  ;;  %v2541_v29 = vld [vmem:[%s5473_s29 + $0x168] sm:$0xf0]  ;;  %v3483_v32 = vld [vmem:[%s5473_s29 + $0x264] sm:$0xf]  ;;  %v3465_v50 = vld [vmem:[%s5473_s29 + $0x1d4] sm:$0xf] }
  0x3d   :  { %727 = vmatpush.bf16.msrb.mxu0 %v2644_v34  ;;  %2753 = vmatmul.msk.bf16.vlgmr.msrb.gmra.mxu2 %vm667_vm0, %v4234_v43  ;;  %v2616_v34 = vor.u32 %v3469_v20, %v2613_v23  ;;  %v3467_v36 = vld [vmem:[%s5473_s29 + $0x1e4] sm:$0xf]  ;;  %v2544_v38 = vor.u32 %v3451_v28, %v2541_v29  ;;  %v2733_v41 = vld [vmem:[%s5473_s29 + $0x2e8] sm:$0xf0]  ;;  %v2597_v52 = vld [vmem:[%s5473_s29 + $0x1d8] sm:$0xf0] }
  0x3e   :  { %778 = vmatpush.bf16.msra.mxu2 %v2464_v30  ;;  %v4334_v30 = vpack.c.bf16 %v63_v15, %v63_v15  ;;  %v3499_v40 = vld [vmem:[%s5473_s29 + $0x2e4] sm:$0xf]  ;;  %v3497_v53 = vld [vmem:[%s5473_s29 + $0x2d4] sm:$0xf]  ;;  %v2725_v55 = vld [vmem:[%s5473_s29 + $0x2d8] sm:$0xf0] }
  0x3f   :  { %766 = vmatpush.bf16.msrb.mxu3 %v2392_v35  ;;  %v2744_v35 = vor.u32 %v3501_v24, %v2741_v25  ;;  %v2736_v49 = vor.u32 %v3499_v40, %v2733_v41  ;;  %v3479_v60 = vld [vmem:[%s5473_s29 + $0x244] sm:$0xf]  ;;  %v2653_v61 = vld [vmem:[%s5473_s29 + $0x248] sm:$0xf0] }
  0x40   :  { %740 = vmatpush.bf16.msrb.mxu1 %v2708_v42  ;;  %v2672_v42 = vor.u32 %v3483_v32, %v2669_v33  ;;  %v3463_v0 = vld [vmem:[%s5473_s29 + $0x1c4] sm:$0xf] }
  0x41   :  { %728 = vmatpush.bf16.msrb.mxu0 %v2636_v47  ;;  %v2661_v47 = vld [vmem:[%s5473_s29 + $0x258] sm:$0xf0] }
  0x42   :  { %779 = vmatpush.bf16.msra.mxu2 %v2456_v44  ;;  %v3449_v44 = vld [vmem:[%s5473_s29 + $0x154] sm:$0xf]  ;;  %v2664_v59 = vor.u32 %v3481_v46, %v2661_v47 }
  0x43   :  { %767 = vmatpush.bf16.msrb.mxu3 %v2384_v48  ;;  %v2608_v48 = vor.u32 %v3467_v36, %v2605_v39  ;;  %v2536_v54 = vor.u32 %v3449_v44, %v2533_v45 }
  0x44   :  { %741 = vmatpush.bf16.msrb.mxu1 %v2700_v56  ;;  %v3447_v56 = vld [vmem:[%s5473_s29 + $0x144] sm:$0xf] }
  0x45   :  { %729 = vmatpush.bf16.msrb.mxu0 %v2628_v62  ;;  %v2600_v62 = vor.u32 %v3465_v50, %v2597_v52 }
  0x46   :  { %780 = vmatpush.bf16.msra.mxu2 %v2448_v57  ;;  %v2525_v57 = vld [vmem:[%s5473_s29 + $0x148] sm:$0xf0] }
  0x47   :  { %768 = vmatpush.bf16.msrb.mxu3 %v2376_v63  ;;  %v2728_v63 = vor.u32 %v3497_v53, %v2725_v55 }
  0x48   :  { %742 = vmatpush.bf16.msrb.mxu1 %v2692_v8 }
  0x49   :  { %730 = vmatpush.bf16.msrb.mxu0 %v2620_v16 }
  0x4a   :  { %781 = vmatpush.bf16.msra.mxu2 %v2440_v12 }
  0x4b   :  { %769 = vmatpush.bf16.msrb.mxu3 %v2368_v17 }
  0x4c   :  { %743 = vmatpush.bf16.msrb.mxu1 %v2684_v26  ;;  %731 = vmatmul.bf16.vlgmr.msrb.gmra.mxu0 %v4334_v30 }
  0x4d   :  { %788 = vmatpush.bf16.msra.mxu0 %v2552_v21 }
  0x4e   :  { %782 = vmatpush.bf16.msra.mxu2 %v2432_v31  ;;  %770 = vmatmul.bf16.vlgmr.msrb.gmra.mxu3 %v4131_v58 }
  0x4f   :  { %814 = vmatpush.bf16.msra.mxu3 %v2680_v22  ;;  %744 = vmatmul.bf16.vlgmr.msrb.gmra.mxu1 %v4345_v37 }
  0x50   :  { %801 = vmatpush.bf16.msra.mxu1 %v2616_v34 }
  0x51   :  { %789 = vmatpush.bf16.msra.mxu0 %v2544_v38  ;;  %783 = vmatmul.bf16.vlgmr.msra.gmra.mxu2 %v4153_v4 }
  0x52   :  { %827 = vmatpush.bf16.msrb.mxu2 %v2744_v35 }
  0x53   :  { %815 = vmatpush.bf16.msra.mxu3 %v2672_v42 }
  0x54   :  { %802 = vmatpush.bf16.msra.mxu1 %v2608_v48 }
  0x56   :  { %828 = vmatpush.bf16.msrb.mxu2 %v2736_v49 }
  0x57   :  { %25 = vsyncpa [#allocation5], 0  ;;  %790 = vmatpush.bf16.msra.mxu0 %v2536_v54  ;;  %v2528_v1 = vor.u32 %v3447_v56, %v2525_v57  ;;  %v2589_v2 = vld [vmem:[%s5473_s29 + $0x1c8] sm:$0xf0]  ;;  %v3495_v4 = vld [vmem:[%s5473_s29 + $0x2c4] sm:$0xf]  ;;  %816 = vmatpush.bf16.msra.mxu3 %v2664_v59  ;;  %v2656_v5 = vor.u32 %v3479_v60, %v2653_v61 }
  0x58   :  { %v2717_v58 = vld [vmem:[%s5473_s29 + $0x2c8] sm:$0xf0]  ;;  %v3445_v6 = vld [vmem:[%s5473_s29 + $0x134] sm:$0xf]  ;;  %v2517_v7 = vld [vmem:[%s5473_s29 + $0x138] sm:$0xf0]  ;;  %803 = vmatpush.bf16.msra.mxu1 %v2600_v62  ;;  %v2592_v10 = vor.u32 %v3463_v0, %v2589_v2 }
  0x59   :  { %v3477_v8 = vld [vmem:[%s5473_s29 + $0x234] sm:$0xf]  ;;  %v2645_v9 = vld [vmem:[%s5473_s29 + $0x238] sm:$0xf0]  ;;  %v2720_v11 = vor.u32 %v3495_v4, %v2717_v58  ;;  %v2520_v13 = vor.u32 %v3445_v6, %v2517_v7  ;;  %v3443_v18 = vld [vmem:[%s5473_s29 + $0x124] sm:$0xf] }
  0x5a   :  { %829 = vmatpush.bf16.msrb.mxu2 %v2728_v63  ;;  %v3461_v12 = vld [vmem:[%s5473_s29 + $0x1b4] sm:$0xf]  ;;  %v2581_v14 = vld [vmem:[%s5473_s29 + $0x1b8] sm:$0xf0]  ;;  %v2648_v17 = vor.u32 %v3477_v8, %v2645_v9  ;;  %v2509_v19 = vld [vmem:[%s5473_s29 + $0x128] sm:$0xf0] }
  0x5b   :  { %791 = vmatpush.bf16.msra.mxu0 %v2528_v1  ;;  %v3493_v15 = vld [vmem:[%s5473_s29 + $0x2b4] sm:$0xf]  ;;  %v2709_v16 = vld [vmem:[%s5473_s29 + $0x2b8] sm:$0xf0]  ;;  %817 = vmatpush.bf16.msra.mxu3 %v2656_v5  ;;  %v3475_v20 = vld [vmem:[%s5473_s29 + $0x224] sm:$0xf]  ;;  %v2584_v22 = vor.u32 %v3461_v12, %v2581_v14  ;;  %v2512_v25 = vor.u32 %v3443_v18, %v2509_v19 }
  0x5c   :  { %v2637_v21 = vld [vmem:[%s5473_s29 + $0x228] sm:$0xf0]  ;;  %804 = vmatpush.bf16.msra.mxu1 %v2592_v10  ;;  %v2712_v23 = vor.u32 %v3493_v15, %v2709_v16  ;;  %v3459_v24 = vld [vmem:[%s5473_s29 + $0x1a4] sm:$0xf]  ;;  %v3441_v31 = vld [vmem:[%s5473_s29 + $0x114] sm:$0xf] }
  0x5d   :  { %v2573_v26 = vld [vmem:[%s5473_s29 + $0x1a8] sm:$0xf0]  ;;  %v3491_v27 = vld [vmem:[%s5473_s29 + $0x2a4] sm:$0xf]  ;;  %v2640_v29 = vor.u32 %v3475_v20, %v2637_v21  ;;  %v2501_v32 = vld [vmem:[%s5473_s29 + $0x118] sm:$0xf0] }
  0x5e   :  { %830 = vmatpush.bf16.msrb.mxu2 %v2720_v11  ;;  %v2701_v28 = vld [vmem:[%s5473_s29 + $0x2a8] sm:$0xf0]  ;;  %v3473_v33 = vld [vmem:[%s5473_s29 + $0x214] sm:$0xf]  ;;  %v2629_v34 = vld [vmem:[%s5473_s29 + $0x218] sm:$0xf0]  ;;  %v2576_v35 = vor.u32 %v3459_v24, %v2573_v26  ;;  %v2504_v39 = vor.u32 %v3441_v31, %v2501_v32 }
  0x5f   :  { %792 = vmatpush.bf16.msra.mxu0 %v2520_v13  ;;  %818 = vmatpush.bf16.msra.mxu3 %v2648_v17  ;;  %v2704_v36 = vor.u32 %v3491_v27, %v2701_v28  ;;  %v3457_v38 = vld [vmem:[%s5473_s29 + $0x194] sm:$0xf]  ;;  %v2565_v40 = vld [vmem:[%s5473_s29 + $0x198] sm:$0xf0]  ;;  %v2632_v44 = vor.u32 %v3473_v33, %v2629_v34  ;;  %v3439_v45 = vld [vmem:[%s5473_s29 + $0x104] sm:$0xf] }
  0x60   :  { %805 = vmatpush.bf16.msra.mxu1 %v2584_v22  ;;  %v3489_v41 = vld [vmem:[%s5473_s29 + $0x294] sm:$0xf]  ;;  %v2693_v42 = vld [vmem:[%s5473_s29 + $0x298] sm:$0xf0]  ;;  %v2493_v46 = vld [vmem:[%s5473_s29 + $0x108] sm:$0xf0]  ;;  %v2568_v52 = vor.u32 %v3457_v38, %v2565_v40 }
  0x61   :  { %v3471_v47 = vld [vmem:[%s5473_s29 + $0x204] sm:$0xf]  ;;  %v2621_v48 = vld [vmem:[%s5473_s29 + $0x208] sm:$0xf0]  ;;  %v2696_v53 = vor.u32 %v3489_v41, %v2693_v42  ;;  %v2496_v54 = vor.u32 %v3439_v45, %v2493_v46  ;;  %v3512_v0 = vld [vmem:[%s5452_s3 + $0x38] sm:$0xff]  ;;  %vm1201_vm1 = vcmask 1044480  }
  0x62   :  { %831 = vmatpush.bf16.msrb.mxu2 %v2712_v23  ;;  %v3503_v49 = vld [vmem:[%s5473_s29 + $0x304] sm:$0xf]  ;;  %v2749_v50 = vld [vmem:[%s5473_s29 + $0x308] sm:$0xf0]  ;;  %v2624_v57 = vor.u32 %v3471_v47, %v2621_v48  ;;  %v3511_v1 = vld [vmem:[%s5452_s3 + $0x30] sm:$0xff]  ;;  %vm1197_vm2 = vcmask 80896  }
  0x63   :  { %793 = vmatpush.bf16.msra.mxu0 %v2512_v25  ;;  %819 = vmatpush.bf16.msra.mxu3 %v2640_v29  ;;  %v3455_v55 = vld [vmem:[%s5473_s29 + $0x184] sm:$0xf]  ;;  %v2557_v56 = vld [vmem:[%s5473_s29 + $0x188] sm:$0xf0]  ;;  %v2752_v61 = vor.u32 %v3503_v49, %v2749_v50  ;;  %v171_v6 = vld [vmem:[%s5458_s9] sm:$0x3] }
  0x64   :  { %806 = vmatpush.bf16.msra.mxu1 %v2576_v35  ;;  %v3487_v59 = vld [vmem:[%s5473_s29 + $0x284] sm:$0xf]  ;;  %v2685_v60 = vld [vmem:[%s5473_s29 + $0x288] sm:$0xf0]  ;;  %v2560_v62 = vor.u32 %v3455_v55, %v2557_v56  ;;  %v3520_v9 = vld [vmem:[%s5452_s3 + $0x78] sm:$0xff]  ;;  %v173_v11 = vperm.slane %v171_v6, 0 }
  0x65   :  { %v2688_v63 = vor.u32 %v3487_v59, %v2685_v60  ;;  %v3505_v58 = vld [vmem:[%s5452_s3] sm:$0xff]  ;;  %v3519_v13 = vld [vmem:[%s5452_s3 + $0x70] sm:$0xff]  ;;  %v3518_v19 = vld [vmem:[%s5452_s3 + $0x68] sm:$0xff]  ;;  %v174_v42 = vperm.slane %v171_v6, 1  ;;  %s5475_s21 = sld [smem:[#allocation10_spill]]  ;;  %s3779_s25 = smov [#allocation4]  }
  0x66   :  { %832 = vmatpush.bf16.msrb.mxu2 %v2704_v36  ;;  %v3517_v22 = vld [vmem:[%s5452_s3 + $0x60] sm:$0xff]  ;;  %v3516_v27 = vld [vmem:[%s5452_s3 + $0x58] sm:$0xff]  ;;  %v3515_v32 = vld [vmem:[%s5452_s3 + $0x50] sm:$0xff]  ;;  %s2330_s0 = sshll.u32 %s3779_s25, 4  ;;  %s2332_s19 = sshll.u32 %s5466_s17, 4  ;;  %vm2310_vm3 = vcmask 125952   ;;  %s2331_s0 = int_to_ptr.vmem [resolvable:$true] %s2330_s0  ;;  %s2333_s19 = int_to_ptr.hbm [resolvable:$true] %s2332_s19 }
  0x67   :  { %794 = vmatpush.bf16.msra.mxu0 %v2504_v39  ;;  %820 = vmatpush.bf16.msra.mxu3 %v2632_v44  ;;  %v3514_v38 = vld [vmem:[%s5452_s3 + $0x48] sm:$0xff]  ;;  %v3513_v39 = vld [vmem:[%s5452_s3 + $0x40] sm:$0xff]  ;;  %v3523_v6 = vld [vmem:[%s5453_s4 + $0x10] sm:$0xff]  ;;  %s3780_s1 = smov [#allocation6]   ;;  %s2321_s23 = sshll.u32 %s5465_s16, 4  ;;  %s2322_s23 = int_to_ptr.hbm [resolvable:$true] %s2321_s23 }
  0x68   :  { %807 = vmatpush.bf16.msra.mxu1 %v2568_v52  ;;  %s2341_s20 = sshll.u32 %s3780_s1, 4  ;;  %s2342_s20 = int_to_ptr.vmem [resolvable:$true] %s2341_s20 }
  0x6a   :  { %833 = vmatpush.bf16.msrb.mxu2 %v2696_v53 }
  0x6b   :  { %795 = vmatpush.bf16.msra.mxu0 %v2496_v54  ;;  %821 = vmatpush.bf16.msra.mxu3 %v2624_v57 }
  0x6c   :  { %808 = vmatpush.bf16.msra.mxu1 %v2560_v62 }
  0x6e   :  { %796 = vmatmul.bf16.vlgmr.msra.gmra.mxu0 %v4117_v51  ;;  %822 = vmatmul.bf16.vlgmr.msra.gmra.mxu3 %v4334_v30  ;;  %v3510_v51 = vld [vmem:[%s5452_s3 + $0x28] sm:$0xff]  ;;  %v3507_v30 = vld [vmem:[%s5452_s3 + $0x10] sm:$0xff] }
  0x6f   :  { %847 = vmatpush.bf16.msrb.mxu0 %v2752_v61  ;;  %834 = vmatpush.bf16.msrb.mxu2 %v2688_v63 }
  0x70   :  { %809 = vmatmul.bf16.vlgmr.msra.gmra.mxu1 %v4151_v3  ;;  %v3509_v3 = vld [vmem:[%s5452_s3 + $0x20] sm:$0xff]  ;;  %1002 = vmatpush.bf16.msrb.mxu3 %v3520_v9 }
  0x71   :  { %989 = vmatpush.bf16.msrb.mxu1 %v3512_v0 }
  0x72   :  { %835 = vmatmul.bf16.vlgmr.msrb.gmra.mxu2 %v4345_v37  ;;  %v3506_v37 = vld [vmem:[%s5452_s3 + $0x8] sm:$0xff] }
  0x74   :  { %1003 = vmatpush.bf16.msrb.mxu3 %v3519_v13  ;;  %v3529_v13 = vld [vmem:[%s5454_s5] sm:$0xff] }
  0x75   :  { %990 = vmatpush.bf16.msrb.mxu1 %v3511_v1  ;;  %v3528_v1 = vld [vmem:[%s5453_s4 + $0x38] sm:$0xff] }
  0x76   :  { %1085 = vmatpush.bf16.msra.mxu0 %v3528_v1 }
  0x78   :  { %1004 = vmatpush.bf16.msrb.mxu3 %v3518_v19 }
  0x79   :  { %991 = vmatpush.bf16.msrb.mxu1 %v3510_v51  ;;  %v3536_v51 = vld [vmem:[%s5454_s5 + $0x38] sm:$0xff] }
  0x7a   :  { %1166 = vmatpush.bf16.msra.mxu2 %v3536_v51 }
  0x7c   :  { %1005 = vmatpush.bf16.msrb.mxu3 %v3517_v22  ;;  %v3537_v22 = vld [vmem:[%s5455_s6] sm:$0x10] }
  0x7d   :  { %992 = vmatpush.bf16.msrb.mxu1 %v3509_v3  ;;  %v3527_v3 = vld [vmem:[%s5453_s4 + $0x30] sm:$0xff] }
  0x7e   :  { %2754 = vmatmul.msk.bf16.vlgmr.msrb.gmra.mxu0 %vm667_vm0, %v4234_v43  ;;  %v3508_v43 = vld [vmem:[%s5452_s3 + $0x18] sm:$0xff] }
  0x7f   :  { %1086 = vmatpush.bf16.msra.mxu0 %v3527_v3 }
  0x80   :  { %1006 = vmatpush.bf16.msrb.mxu3 %v3516_v27  ;;  %v3552_v27 = vld [vmem:[%s5456_s7 + $0x74] sm:$0xf] }
  0x81   :  { %993 = vmatpush.bf16.msrb.mxu1 %v3508_v43  ;;  %v3535_v43 = vld [vmem:[%s5454_s5 + $0x30] sm:$0xff] }
  0x82   :  { %1167 = vmatpush.bf16.msra.mxu2 %v3535_v43  ;;  %v2906_v43 = vld [vmem:[%s5456_s7 + $0x20] sm:$0xf] }
  0x84   :  { %1007 = vmatpush.bf16.msrb.mxu3 %v3515_v32  ;;  %v3551_v32 = vld [vmem:[%s5456_s7 + $0x64] sm:$0xf0] }
  0x85   :  { %994 = vmatpush.bf16.msrb.mxu1 %v3507_v30  ;;  %v3526_v30 = vld [vmem:[%s5453_s4 + $0x28] sm:$0xff] }
  0x86   :  { %1087 = vmatpush.bf16.msra.mxu0 %v3526_v30  ;;  %v3543_v30 = vld [vmem:[%s5456_s7 + $0x24] sm:$0xf0] }
  0x88   :  { %1008 = vmatpush.bf16.msrb.mxu3 %v3514_v38 }
  0x89   :  { %995 = vmatpush.bf16.msrb.mxu1 %v3506_v37  ;;  %v3534_v37 = vld [vmem:[%s5454_s5 + $0x28] sm:$0xff] }
  0x8a   :  { %1168 = vmatpush.bf16.msra.mxu2 %v3534_v37 }
  0x8c   :  { %1009 = vmatpush.bf16.msrb.mxu3 %v3513_v39 }
  0x8d   :  { %996 = vmatpush.bf16.msrb.mxu1 %v3505_v58  ;;  %v3524_v58 = vld [vmem:[%s5453_s4 + $0x18] sm:$0xff] }
  0xa9   :  { %v680_v2 = vpop.f32.mrf.mxu0 }
  0xaa   :  { %v681_v14 = vadd.f32 %v680_v2, %v173_v11  ;;  %v3525_v2 = vld [vmem:[%s5453_s4 + $0x20] sm:$0xff]  ;;  %v3530_v11 = vld [vmem:[%s5454_s5 + $0x8] sm:$0xff] }
  0xab   :  { %1088 = vmatpush.bf16.msra.mxu0 %v3525_v2  ;;  %v3542_v2 = vld [vmem:[%s5456_s7 + $0x24] sm:$0xf] }
  0xac   :  { %v693_v4 = vpop.f32.mrf.mxu1 }
  0xad   :  { %v694_v16 = vadd.f32 %v693_v4, %v681_v14  ;;  %v3533_v4 = vld [vmem:[%s5454_s5 + $0x20] sm:$0xff] }
  0xae   :  { %1169 = vmatpush.bf16.msra.mxu2 %v3533_v4  ;;  %v3669_v14 = vld [vmem:[%s5459_s10] ss:$0 sm:$0xff]  ;;  %v2908_v4 = vld [vmem:[%s5456_s7 + $0x28] sm:$0xf0] }
  0xaf   :  { %1089 = vmatpush.bf16.msra.mxu0 %v3524_v58  ;;  %v2907_v58 = vor.u32 %v3543_v30, %v2906_v43  ;;  %v3066_v30 = vld [vmem:[%s5457_s8 + $0xe0] sm:$0xf] }
  0xb0   :  { %v706_v5 = vpop.f32.mrf.mxu2 }
  0xb1   :  { %v719_v7 = vpop.f32.mrf.mxu3  ;;  %v682_v8 = vpop.f32.mrf.mxu0  ;;  %v707_v18 = vadd.f32 %v706_v5, %v694_v16  ;;  %v3532_v5 = vld [vmem:[%s5454_s5 + $0x18] sm:$0xff] }
  0xb2   :  { %1170 = vmatpush.bf16.msra.mxu2 %v3532_v5 }
  0xb3   :  { %v720_v20 = vadd.f32 %v719_v7, %v707_v18  ;;  %v3531_v7 = vld [vmem:[%s5454_s5 + $0x10] sm:$0xff]  ;;  %1090 = vmatpush.bf16.msra.mxu0 %v3523_v6  ;;  %v2911_v6 = vor.u32 %v3542_v2, %v2908_v4  ;;  %v3585_v2 = vld [vmem:[%s5457_s8 + $0xf8] sm:$0xf0]  ;;  %v3582_v4 = vld [vmem:[%s5457_s8 + $0xe4] sm:$0xf] }
  0xb4   :  { %v695_v10 = vpop.f32.mrf.mxu1 }
  0xb5   :  { %v3522_v10 = vld [vmem:[%s5453_s4 + $0x8] sm:$0xff] }
  0xb6   :  { %1171 = vmatpush.bf16.msra.mxu2 %v3531_v7  ;;  %v1182_v7 = vld [vmem:[%s5475_s21] sm:$0xff]  ;;  %s2343_s21 = sshll.u32 %s5467_s18, 4  ;;  %s2344_s21 = int_to_ptr.hbm [resolvable:$true] %s2343_s21 }
  0xb7   :  { %1091 = vmatpush.bf16.msra.mxu0 %v3522_v10 }
  0xb8   :  { %v708_v12 = vpop.f32.mrf.mxu2 }
  0xb9   :  { %v721_v15 = vpop.f32.mrf.mxu3  ;;  %v3521_v12 = vld [vmem:[%s5453_s4] sm:$0xff] }
  0xba   :  { %1172 = vmatpush.bf16.msra.mxu2 %v3530_v11 }
  0xbb   :  { %1092 = vmatpush.bf16.msra.mxu0 %v3521_v12  ;;  %v2898_v12 = vld [vmem:[%s5456_s7 + $0x10] sm:$0xf] }
  0xbe   :  { %1173 = vmatpush.bf16.msra.mxu2 %v3529_v13  ;;  %v3541_v13 = vld [vmem:[%s5456_s7 + $0x14] sm:$0xf0] }
  0xc0   :  { %v758_v17 = vpop.f32.mrf.mxu2 }
  0xc8   :  { %v760_v24 = vpop.f32.mrf.mxu2 }
  0xc9   :  { %v732_v21 = vpop.f32.mrf.mxu0 }
  0xca   :  { %v733_v23 = vadd.f32 %v732_v21, %v720_v20  ;;  %v2885_v21 = vld [vmem:[%s5455_s6] sm:$0xf] }
  0xcc   :  { %v745_v25 = vpop.f32.mrf.mxu1 }
  0xcd   :  { %v746_v26 = vadd.f32 %v745_v25, %v733_v23  ;;  %v2886_v23 = vor.u32 %v3537_v22, %v2885_v21  ;;  %v2946_v25 = vld [vmem:[%s5456_s7 + $0x70] sm:$0xf]  ;;  %v2892_v22 = vld [vmem:[%s5456_s7 + $0x8] sm:$0xf0] }
  0xcf   :  { %v759_v28 = vadd.f32 %v758_v17, %v746_v26  ;;  %v1203_v24 = vsel %vm1201_vm1, %v2886_v23, 0  ;;  %v3553_v26 = vld [vmem:[%s5456_s7 + $0x74] sm:$0xf0] }
  0xd0   :  { %1212 = vmatpush.bf16.msra.mxu1 %v1203_v24  ;;  %v3374_v24 = vld [vmem:[%s5457_s8 + $0x348] sm:$0xf] }
  0xd1   :  { %v853_v29 = vmax.f32 %v759_v28, 0.0  ;;  %v734_v31 = vpop.f32.mrf.mxu0  ;;  %v771_v35 = vpop.f32.mrf.mxu3  ;;  %v2947_v28 = vor.u32 %v3553_v26, %v2946_v25  ;;  %v3662_v25 = vld [vmem:[%s5457_s8 + $0x360] sm:$0xf0]  ;;  %v3659_v26 = vld [vmem:[%s5457_s8 + $0x34c] sm:$0xf] }
  0xd2   :  { %v772_v44 = vadd.f32 %v771_v35, %v174_v42  ;;  %v2938_v31 = vld [vmem:[%s5456_s7 + $0x60] sm:$0xf]  ;;  %v2940_v35 = vld [vmem:[%s5456_s7 + $0x68] sm:$0xf0]  ;;  %v3548_v42 = vld [vmem:[%s5456_s7 + $0x54] sm:$0xf] }
  0xd3   :  { %v855_v33 = vpack.c.bf16 %v853_v29, %v853_v29  ;;  %v2948_v29 = vld [vmem:[%s5456_s7 + $0x78] sm:$0xf0]  ;;  %1322 = vmatpush.bf16.msra.mxu3 %v2947_v28  ;;  %v2939_v38 = vor.u32 %v3551_v32, %v2938_v31  ;;  %v3376_v28 = vld [vmem:[%s5457_s8 + $0x364] sm:$0xf0]  ;;  %v3655_v31 = vld [vmem:[%s5457_s8 + $0x328] sm:$0xf0] }
  0xd4   :  { %v784_v34 = vpop.f32.mrf.mxu2  ;;  %v747_v36 = vpop.f32.mrf.mxu1  ;;  %v3379_v32 = vor.u32 %v3659_v26, %v3376_v28  ;;  %v3571_v26 = vld [vmem:[%s5457_s8 + $0x88] sm:$0xf0]  ;;  %v3012_v28 = vld [vmem:[%s5457_s8 + $0x8c] sm:$0xf0] }
  0xd5   :  { %997 = vmatmul.bf16.vlgmr.msrb.gmra.mxu1 %v855_v33  ;;  %v785_v46 = vadd.f32 %v784_v34, %v772_v44  ;;  %v2951_v33 = vor.u32 %v3552_v27, %v2948_v29  ;;  %v3550_v34 = vld [vmem:[%s5456_s7 + $0x64] sm:$0xf]  ;;  %v3670_v36 = vld [vmem:[%s5460_s11] ss:$0 sm:$0xff]  ;;  %v2932_v44 = vld [vmem:[%s5456_s7 + $0x58] sm:$0xf0]  ;;  %v3375_v27 = vor.u32 %v3662_v25, %v3374_v24 }
  0xd6   :  { %v2943_v39 = vor.u32 %v3550_v34, %v2940_v35  ;;  %v3346_v29 = vld [vmem:[%s5457_s8 + $0x310] sm:$0xf]  ;;  %v3150_v35 = vld [vmem:[%s5457_s8 + $0x188] sm:$0xf] }
  0xd7   :  { %1335 = vmatpush.bf16.msrb.mxu0 %v2951_v33  ;;  %1323 = vmatpush.bf16.msra.mxu3 %v2939_v38  ;;  %v3652_v33 = vld [vmem:[%s5457_s8 + $0x314] sm:$0xf]  ;;  %v3348_v34 = vld [vmem:[%s5457_s8 + $0x32c] sm:$0xf0]  ;;  %v3606_v38 = vld [vmem:[%s5457_s8 + $0x1a0] sm:$0xf0] }
  0xd8   :  { %2085 = vmatpush.bf16.msrb.mxu2 %v3375_v27  ;;  %v3010_v24 = vld [vmem:[%s5457_s8 + $0x70] sm:$0xf]  ;;  %v3568_v27 = vld [vmem:[%s5457_s8 + $0x74] sm:$0xf] }
  0xd9   :  { %v773_v41 = vpop.f32.mrf.mxu3 }
  0xda   :  { %v3549_v41 = vld [vmem:[%s5456_s7 + $0x54] sm:$0xf0] }
  0xdb   :  { %1336 = vmatpush.bf16.msrb.mxu0 %v2943_v39  ;;  %v3603_v39 = vld [vmem:[%s5457_s8 + $0x18c] sm:$0xf] }
  0xdc   :  { %v786_v40 = vpop.f32.mrf.mxu2 }
  0xdd   :  { %v2930_v40 = vld [vmem:[%s5456_s7 + $0x50] sm:$0xf] }
  0xeb   :  { %v797_v45 = vpop.f32.mrf.mxu0 }
  0xec   :  { %v798_v48 = vadd.f32 %v797_v45, %v785_v46 }
  0xed   :  { %v810_v47 = vpop.f32.mrf.mxu1 }
  0xee   :  { %v811_v52 = vadd.f32 %v810_v47, %v798_v48  ;;  %v2931_v47 = vor.u32 %v3549_v41, %v2930_v40  ;;  %v3671_v48 = vld [vmem:[%s5461_s12] ss:$0 sm:$0xff]  ;;  %v3152_v40 = vld [vmem:[%s5457_s8 + $0x1a4] sm:$0xf0]  ;;  %v3351_v41 = vor.u32 %v3652_v33, %v3348_v34  ;;  %v3617_v34 = vld [vmem:[%s5457_s8 + $0x1fc] sm:$0xf] }
  0xef   :  { %v3672_v33 = vld [vmem:[%s5462_s13] ss:$0 sm:$0xff] }
  0xf0   :  { %1324 = vmatpush.bf16.msra.mxu3 %v2931_v47  ;;  %v3645_v47 = vld [vmem:[%s5457_s8 + $0x2dc] sm:$0xf] }
  0xf1   :  { %v823_v49 = vpop.f32.mrf.mxu3 }
  0xf2   :  { %v824_v54 = vadd.f32 %v823_v49, %v811_v52  ;;  %v2935_v49 = vor.u32 %v3548_v42, %v2932_v44  ;;  %v3547_v52 = vld [vmem:[%s5456_s7 + $0x44] sm:$0xf0]  ;;  %v3151_v42 = vor.u32 %v3606_v38, %v3150_v35  ;;  %v3155_v44 = vor.u32 %v3603_v39, %v3152_v40  ;;  %v3208_v35 = vld [vmem:[%s5457_s8 + $0x214] sm:$0xf0] }
  0xf3   :  { %v799_v50 = vpop.f32.mrf.mxu0  ;;  %v3015_v38 = vor.u32 %v3568_v27, %v3012_v28  ;;  %v2982_v39 = vld [vmem:[%s5457_s8 + $0x38] sm:$0xf]  ;;  %v3593_v27 = vld [vmem:[%s5457_s8 + $0x138] sm:$0xf0]  ;;  %v3590_v28 = vld [vmem:[%s5457_s8 + $0x124] sm:$0xf] }
  0xf4   :  { %v2922_v50 = vld [vmem:[%s5456_s7 + $0x40] sm:$0xf]  ;;  %1337 = vmatpush.bf16.msrb.mxu0 %v2935_v49  ;;  %v3122_v49 = vld [vmem:[%s5457_s8 + $0x150] sm:$0xf]  ;;  %2072 = vmatpush.bf16.msrb.mxu1 %v3151_v42  ;;  %v3613_v42 = vld [vmem:[%s5457_s8 + $0x1d8] sm:$0xf0] }
  0xf5   :  { %v836_v53 = vpop.f32.mrf.mxu2  ;;  %v812_v55 = vpop.f32.mrf.mxu1 }
  0xf6   :  { %v837_v56 = vadd.f32 %v836_v53, %v824_v54  ;;  %v3546_v53 = vld [vmem:[%s5456_s7 + $0x44] sm:$0xf]  ;;  %v2924_v54 = vld [vmem:[%s5456_s7 + $0x48] sm:$0xf0]  ;;  %v2923_v55 = vor.u32 %v3547_v52, %v2922_v50 }
  0xf7   :  { %v3599_v50 = vld [vmem:[%s5457_s8 + $0x168] sm:$0xf0] }
  0xf8   :  { %1325 = vmatpush.bf16.msra.mxu3 %v2923_v55  ;;  %v3123_v52 = vor.u32 %v3599_v50, %v3122_v49  ;;  %v3610_v49 = vld [vmem:[%s5457_s8 + $0x1c4] sm:$0xf]  ;;  %v3180_v50 = vld [vmem:[%s5457_s8 + $0x1dc] sm:$0xf0] }
  0xf9   :  { %v825_v57 = vpop.f32.mrf.mxu3 }
  0xfa   :  { %v2927_v57 = vor.u32 %v3546_v53, %v2924_v54  ;;  %v3596_v53 = vld [vmem:[%s5457_s8 + $0x154] sm:$0xf]  ;;  %v3124_v54 = vld [vmem:[%s5457_s8 + $0x16c] sm:$0xf0]  ;;  %2073 = vmatpush.bf16.msrb.mxu1 %v3123_v52 }
  0xfb   :  { %v849_v59 = vpop.f32.mrf.mxu0  ;;  %v3382_v52 = vld [vmem:[%s5457_s8 + $0x350] sm:$0xf] }
  0xfc   :  { %v850_v60 = vadd.f32 %v849_v59, %v837_v56  ;;  %v2914_v59 = vld [vmem:[%s5456_s7 + $0x30] sm:$0xf]  ;;  %1338 = vmatpush.bf16.msrb.mxu0 %v2927_v57  ;;  %v3290_v57 = vld [vmem:[%s5457_s8 + $0x2a0] sm:$0xf] }
  0xfd   :  { %v838_v61 = vpop.f32.mrf.mxu2 }
  0xfe   :  { %v854_v62 = vmax.f32 %v850_v60, 0.0  ;;  %v3545_v60 = vld [vmem:[%s5456_s7 + $0x34] sm:$0xf0] }
  0xff   :  { %v2915_v51 = vor.u32 %v3545_v60, %v2914_v59  ;;  %v3641_v59 = vld [vmem:[%s5457_s8 + $0x2b8] sm:$0xf0] }
 0x100   :  { %v856_v63 = vpack.c.bf16 %v854_v62, %v854_v62  ;;  %v3544_v62 = vld [vmem:[%s5456_s7 + $0x34] sm:$0xf] }
 0x101   :  { %1326 = vmatpush.bf16.msra.mxu3 %v2915_v51  ;;  %v3096_v51 = vld [vmem:[%s5457_s8 + $0x134] sm:$0xf0] }
 0x102   :  { %1010 = vmatmul.bf16.vlgmr.msrb.gmra.mxu3 %v856_v63  ;;  %v2916_v63 = vld [vmem:[%s5456_s7 + $0x38] sm:$0xf0] }
 0x103   :  { %v851_v0 = vpop.f32.mrf.mxu0  ;;  %v2919_v3 = vor.u32 %v3544_v62, %v2916_v63  ;;  %v3592_v62 = vld [vmem:[%s5457_s8 + $0x130] sm:$0xf0]  ;;  %v3589_v63 = vld [vmem:[%s5457_s8 + $0x11c] sm:$0xf] }
 0x104   :  { %v3099_v43 = vor.u32 %v3589_v63, %v3096_v51 }
 0x105   :  { %1339 = vmatpush.bf16.msrb.mxu0 %v2919_v3  ;;  %1327 = vmatpush.bf16.msra.mxu3 %v2907_v58  ;;  %v3068_v58 = vld [vmem:[%s5457_s8 + $0xfc] sm:$0xf0] }
 0x109   :  { %1340 = vmatpush.bf16.msrb.mxu0 %v2911_v6  ;;  %v3262_v6 = vld [vmem:[%s5457_s8 + $0x268] sm:$0xf] }
 0x152   :  { %v998_v8 = vpop.f32.mrf.mxu1 }
 0x153   :  { %v999_v15 = vadd.f32 %v3669_v14, %v998_v8  ;;  %v3540_v14 = vld [vmem:[%s5456_s7 + $0x14] sm:$0xf] }
 0x15a   :  { %v1000_v9 = vpop.f32.mrf.mxu1 }
 0x185   :  { %v1011_v16 = vpop.f32.mrf.mxu3 }
 0x186   :  { %v1012_v17 = vadd.f32 %v1011_v16, %v999_v15  ;;  %v2899_v15 = vor.u32 %v3541_v13, %v2898_v12  ;;  %v2900_v16 = vld [vmem:[%s5456_s7 + $0x18] sm:$0xf0]  ;;  %v3038_v12 = vld [vmem:[%s5457_s8 + $0xa8] sm:$0xf] }
 0x188   :  { %v1015_v18 = vmax.f32 %v1012_v17, 0.0  ;;  %v2903_v17 = vor.u32 %v3540_v14, %v2900_v16  ;;  %1328 = vmatpush.bf16.msra.mxu3 %v2899_v15  ;;  %v3578_v14 = vld [vmem:[%s5457_s8 + $0xc0] sm:$0xf0]  ;;  %v3575_v15 = vld [vmem:[%s5457_s8 + $0xac] sm:$0xf] }
 0x189   :  { %v3040_v16 = vld [vmem:[%s5457_s8 + $0xc4] sm:$0xf0] }
 0x18a   :  { %v1016_v19 = vpack.c.bf16 %v1015_v18, %v1015_v18  ;;  %1341 = vmatpush.bf16.msrb.mxu0 %v2903_v17  ;;  %v2890_v18 = vld [vmem:[%s5456_s7] sm:$0xf] }
 0x18c   :  { %1093 = vmatmul.bf16.vlgmr.msra.gmra.mxu0 %v1016_v19  ;;  %1174 = vmatmul.bf16.vlgmr.msra.gmra.mxu2 %v1016_v19  ;;  %v3539_v19 = vld [vmem:[%s5456_s7 + $0x4] sm:$0xf0] }
 0x18d   :  { %v1013_v20 = vpop.f32.mrf.mxu3  ;;  %v2891_v21 = vor.u32 %v3539_v19, %v2890_v18  ;;  %v3234_v18 = vld [vmem:[%s5457_s8 + $0x230] sm:$0xf]  ;;  %v3627_v19 = vld [vmem:[%s5457_s8 + $0x248] sm:$0xf0] }
 0x18e   :  { %v3538_v20 = vld [vmem:[%s5456_s7 + $0x4] sm:$0xf]  ;;  %v3235_v25 = vor.u32 %v3627_v19, %v3234_v18 }
 0x18f   :  { %v2895_v23 = vor.u32 %v3538_v20, %v2892_v22  ;;  %1329 = vmatpush.bf16.msra.mxu3 %v2891_v21  ;;  %v3624_v20 = vld [vmem:[%s5457_s8 + $0x234] sm:$0xf]  ;;  %v3236_v21 = vld [vmem:[%s5457_s8 + $0x24c] sm:$0xf0]  ;;  %v3039_v22 = vor.u32 %v3578_v14, %v3038_v12 }
 0x191   :  { %1342 = vmatpush.bf16.msrb.mxu0 %v2895_v23  ;;  %v3043_v23 = vor.u32 %v3575_v15, %v3040_v16  ;;  %v3600_v15 = vld [vmem:[%s5457_s8 + $0x170] sm:$0xf0]  ;;  %v3597_v16 = vld [vmem:[%s5457_s8 + $0x15c] sm:$0xf] }
 0x193   :  { %2098 = vmatpush.bf16.msrb.mxu3 %v3155_v44  ;;  %v3564_v44 = vld [vmem:[%s5457_s8 + $0x50] sm:$0xf0] }
 0x195   :  { %2111 = vmatpush.bf16.msra.mxu0 %v3379_v32  ;;  %v3620_v32 = vld [vmem:[%s5457_s8 + $0x210] sm:$0xf0] }
 0x199   :  { %2112 = vmatpush.bf16.msra.mxu0 %v3351_v41  ;;  %v3178_v41 = vld [vmem:[%s5457_s8 + $0x1c0] sm:$0xf] }
 0x19a   :  { %v3179_v51 = vor.u32 %v3613_v42, %v3178_v41  ;;  %v3586_v41 = vld [vmem:[%s5457_s8 + $0x100] sm:$0xf0]  ;;  %v3583_v42 = vld [vmem:[%s5457_s8 + $0xec] sm:$0xf] }
 0x209   :  { %v1094_v45 = vpop.f32.mrf.mxu0 }
 0x20a   :  { %v1095_v46 = vadd.f32 %v3670_v36, %v1094_v45  ;;  %v3347_v36 = vor.u32 %v3655_v31, %v3346_v29  ;;  %v3318_v45 = vld [vmem:[%s5457_s8 + $0x2d8] sm:$0xf]  ;;  %v3239_v29 = vor.u32 %v3624_v20, %v3236_v21  ;;  %v3326_v20 = vld [vmem:[%s5457_s8 + $0x2e0] sm:$0xf]  ;;  %v3649_v21 = vld [vmem:[%s5457_s8 + $0x2f8] sm:$0xf0] }
 0x20b   :  { %v3206_v31 = vld [vmem:[%s5457_s8 + $0x1f8] sm:$0xf] }
 0x20c   :  { %2312 = vst.msk [vmem:[#allocation4] sm:$0xff] %vm1197_vm2, %v1095_v46  ;;  %2086 = vmatpush.bf16.msrb.mxu2 %v3347_v36  ;;  %v3011_v36 = vor.u32 %v3571_v26, %v3010_v24  ;;  %v3207_v40 = vor.u32 %v3620_v32, %v3206_v31  ;;  %v3102_v26 = vld [vmem:[%s5457_s8 + $0x120] sm:$0xf]  ;;  %v3327_v31 = vor.u32 %v3649_v21, %v3326_v20  ;;  %v3562_v21 = vld [vmem:[%s5457_s8 + $0x44] sm:$0xf] }
 0x20d   :  { %2335 = dma.vmem_to_hbm [thread:$0]  %s2331_s0, 128, %s2333_s19, [#allocation5]  }
 0x20f   :  { %v1175_v56 = vpop.f32.mrf.mxu2 }
 0x210   :  { %v1176_v61 = vadd.f32 %v3671_v48, %v1175_v56  ;;  %v3320_v48 = vld [vmem:[%s5457_s8 + $0x2f4] sm:$0xf0]  ;;  %v3127_v56 = vor.u32 %v3596_v53, %v3124_v54  ;;  %v3663_v54 = vld [vmem:[%s5457_s8 + $0x368] sm:$0xf0] }
 0x211   :  { %v1096_v0 = vpop.f32.mrf.mxu0  ;;  %v3323_v60 = vor.u32 %v3645_v47, %v3320_v48  ;;  %v3211_v48 = vor.u32 %v3617_v34, %v3208_v35  ;;  %v3642_v34 = vld [vmem:[%s5457_s8 + $0x2c0] sm:$0xf0]  ;;  %v3639_v35 = vld [vmem:[%s5457_s8 + $0x2ac] sm:$0xf] }
 0x212   :  { %v1179_v1 = vmul.f32 0.5, %v1176_v61  ;;  %2313 = vst.msk [vmem:[#allocation6] sm:$0xff] %vm1197_vm2, %v1176_v61  ;;  %v3094_v61 = vld [vmem:[%s5457_s8 + $0x118] sm:$0xf]  ;;  %v3638_v0 = vld [vmem:[%s5457_s8 + $0x2a4] sm:$0xf]  ;;  %2099 = vmatpush.bf16.msrb.mxu3 %v3127_v56 }
 0x213   :  { %v3095_v3 = vor.u32 %v3592_v62, %v3094_v61  ;;  %2113 = vmatpush.bf16.msra.mxu0 %v3323_v60  ;;  %v3384_v56 = vld [vmem:[%s5457_s8 + $0x36c] sm:$0xf0]  ;;  %v2954_v60 = vld [vmem:[%s5457_s8] sm:$0xf]  ;;  %v3557_v61 = vld [vmem:[%s5457_s8 + $0x18] sm:$0xf0] }
 0x214   :  { %v1180_v37 = vmul.f32 1.442695, %v1179_v1  ;;  %v3292_v1 = vld [vmem:[%s5457_s8 + $0x2bc] sm:$0xf0]  ;;  %v3554_v62 = vld [vmem:[%s5457_s8 + $0x4] sm:$0xf] }
 0x215   :  { %2074 = vmatpush.bf16.msrb.mxu1 %v3095_v3  ;;  %v3183_v3 = vor.u32 %v3610_v49, %v3180_v50  ;;  %v3632_v49 = vld [vmem:[%s5457_s8 + $0x274] sm:$0xf]  ;;  %v3272_v50 = vld [vmem:[%s5457_s8 + $0x28c] sm:$0xf0]  ;;  %2346 = dma.vmem_to_hbm [thread:$0]  %s2342_s20, 128, %s2344_s21, [#allocation5]  }
 0x216   :  { %3673 = vpow2.f32 %v1180_v37  ;;  %v3291_v37 = vor.u32 %v3641_v59, %v3290_v57  ;;  %2100 = vmatpush.bf16.msrb.mxu3 %v3099_v43  ;;  %v2983_v57 = vor.u32 %v3564_v44, %v2982_v39  ;;  %v3607_v43 = vld [vmem:[%s5457_s8 + $0x1a8] sm:$0xf0]  ;;  %v3076_v44 = vld [vmem:[%s5457_s8 + $0x104] sm:$0xf0] }
 0x217   :  { %v1177_v5 = vpop.f32.mrf.mxu2 }
 0x218   :  { %v3295_v5 = vor.u32 %v3638_v0, %v3292_v1  ;;  %v2956_v0 = vld [vmem:[%s5457_s8 + $0x1c] sm:$0xf0]  ;;  %v3158_v1 = vld [vmem:[%s5457_s8 + $0x190] sm:$0xf] }
 0x21a   :  { %2114 = vmatpush.bf16.msra.mxu0 %v3295_v5  ;;  %v3354_v5 = vld [vmem:[%s5457_s8 + $0x318] sm:$0xf] }
 0x21c   :  { %v3674_v8 = vpop.eup %3673 }
 0x21d   :  { %v1183_v9 = vmul.f32 %v3674_v8, %v1182_v7  ;;  %v3634_v7 = vld [vmem:[%s5457_s8 + $0x280] sm:$0xf0]  ;;  %v3631_v8 = vld [vmem:[%s5457_s8 + $0x26c] sm:$0xf] }
 0x21e   :  { %v3263_v13 = vor.u32 %v3634_v7, %v3262_v6  ;;  %v3656_v6 = vld [vmem:[%s5457_s8 + $0x330] sm:$0xf0]  ;;  %v2955_v7 = vor.u32 %v3557_v61, %v2954_v60  ;;  %v3244_v60 = vld [vmem:[%s5457_s8 + $0x254] sm:$0xf0] }
 0x21f   :  { %v1184_v10 = vadd.f32 %v1183_v9, %v1095_v46  ;;  %v3648_v46 = vld [vmem:[%s5457_s8 + $0x2f0] sm:$0xf0]  ;;  %v3264_v9 = vld [vmem:[%s5457_s8 + $0x284] sm:$0xf0]  ;;  %v3355_v18 = vor.u32 %v3656_v6, %v3354_v5  ;;  %v3018_v6 = vld [vmem:[%s5457_s8 + $0x78] sm:$0xf] }
 0x220   :  { %v3319_v55 = vor.u32 %v3648_v46, %v3318_v45  ;;  %v3267_v17 = vor.u32 %v3631_v8, %v3264_v9  ;;  %v3561_v45 = vld [vmem:[%s5457_s8 + $0x3c] sm:$0xf]  ;;  %v2984_v46 = vld [vmem:[%s5457_s8 + $0x54] sm:$0xf0] }
 0x221   :  { %v1185_v11 = vpack.c.bf16 %v1184_v10, %v1184_v10  ;;  %v3067_v10 = vor.u32 %v3585_v2, %v3066_v30  ;;  %v2987_v59 = vor.u32 %v3561_v45, %v2984_v46  ;;  %v3604_v30 = vld [vmem:[%s5457_s8 + $0x194] sm:$0xf]  ;;  %v3653_v8 = vld [vmem:[%s5457_s8 + $0x31c] sm:$0xf]  ;;  %v3356_v9 = vld [vmem:[%s5457_s8 + $0x334] sm:$0xf0] }
 0x222   :  { %2087 = vmatpush.bf16.msrb.mxu2 %v3319_v55  ;;  %2115 = vmatpush.bf16.msra.mxu0 %v3267_v17  ;;  %v3660_v55 = vld [vmem:[%s5457_s8 + $0x354] sm:$0xf]  ;;  %v3132_v17 = vld [vmem:[%s5457_s8 + $0x174] sm:$0xf0]  ;;  %v3359_v19 = vor.u32 %v3653_v8, %v3356_v9  ;;  %v3569_v9 = vld [vmem:[%s5457_s8 + $0x7c] sm:$0xf] }
 0x223   :  { %2887 = vmatmul.msk.bf16.vlgmr.msra.gmra.mxu1 %vm1197_vm2, %v1185_v11  ;;  %v3071_v11 = vor.u32 %v3582_v4, %v3068_v58  ;;  %v3383_v4 = vor.u32 %v3663_v54, %v3382_v52  ;;  %v3387_v58 = vor.u32 %v3660_v55, %v3384_v56  ;;  %v3275_v55 = vor.u32 %v3632_v49, %v3272_v50  ;;  %v3242_v56 = vld [vmem:[%s5457_s8 + $0x238] sm:$0xf]  ;;  %v3364_v49 = vld [vmem:[%s5457_s8 + $0x33c] sm:$0xf0] }
 0x224   :  { %2075 = vmatpush.bf16.msrb.mxu1 %v3067_v10  ;;  %v2959_v10 = vor.u32 %v3554_v62, %v2956_v0  ;;  %v3579_v0 = vld [vmem:[%s5457_s8 + $0xc8] sm:$0xf0] }
 0x225   :  { %2101 = vmatpush.bf16.msrb.mxu3 %v3071_v11  ;;  %v3159_v11 = vor.u32 %v3607_v43, %v3158_v1 }
 0x226   :  { %2088 = vmatpush.bf16.msrb.mxu2 %v3291_v37  ;;  %2116 = vmatpush.bf16.msra.mxu0 %v3239_v29  ;;  %v3160_v37 = vld [vmem:[%s5457_s8 + $0x1ac] sm:$0xf0]  ;;  %v3104_v29 = vld [vmem:[%s5457_s8 + $0x13c] sm:$0xf0] }
 0x227   :  { %v3163_v12 = vor.u32 %v3604_v30, %v3160_v37  ;;  %v3107_v39 = vor.u32 %v3590_v28, %v3104_v29  ;;  %v3214_v30 = vld [vmem:[%s5457_s8 + $0x200] sm:$0xf]  ;;  %v3621_v37 = vld [vmem:[%s5457_s8 + $0x218] sm:$0xf0]  ;;  %v2964_v28 = vld [vmem:[%s5457_s8 + $0x24] sm:$0xf0] }
 0x228   :  { %2076 = vmatpush.bf16.msrb.mxu1 %v3039_v22  ;;  %v3646_v22 = vld [vmem:[%s5457_s8 + $0x2e4] sm:$0xf] }
 0x229   :  { %2102 = vmatpush.bf16.msrb.mxu3 %v3043_v23  ;;  %v3328_v23 = vld [vmem:[%s5457_s8 + $0x2fc] sm:$0xf0] }
 0x22a   :  { %2089 = vmatpush.bf16.msrb.mxu2 %v3263_v13  ;;  %2117 = vmatpush.bf16.msra.mxu0 %v3211_v48  ;;  %v3130_v13 = vld [vmem:[%s5457_s8 + $0x158] sm:$0xf]  ;;  %v3331_v32 = vor.u32 %v3646_v22, %v3328_v23  ;;  %v3635_v48 = vld [vmem:[%s5457_s8 + $0x288] sm:$0xf0]  ;;  %v2992_v22 = vld [vmem:[%s5457_s8 + $0x5c] sm:$0xf0] }
 0x22b   :  { %v3131_v24 = vor.u32 %v3600_v15, %v3130_v13  ;;  %v3614_v13 = vld [vmem:[%s5457_s8 + $0x1e0] sm:$0xf0]  ;;  %v3611_v15 = vld [vmem:[%s5457_s8 + $0x1cc] sm:$0xf]  ;;  %v2995_v23 = vor.u32 %v3562_v21, %v2992_v22  ;;  %v3633_v21 = vld [vmem:[%s5457_s8 + $0x27c] sm:$0xf] }
 0x22c   :  { %2077 = vmatpush.bf16.msrb.mxu1 %v3011_v36  ;;  %v3300_v36 = vld [vmem:[%s5457_s8 + $0x2c4] sm:$0xf0]  ;;  %v3280_v22 = vld [vmem:[%s5457_s8 + $0x294] sm:$0xf0] }
 0x22d   :  { %2103 = vmatpush.bf16.msrb.mxu3 %v3015_v38  ;;  %v3103_v38 = vor.u32 %v3593_v27, %v3102_v26  ;;  %v3303_v46 = vor.u32 %v3639_v35, %v3300_v36  ;;  %v3555_v27 = vld [vmem:[%s5457_s8 + $0xc] sm:$0xf]  ;;  %v3664_v36 = vld [vmem:[%s5457_s8 + $0x370] sm:$0xf0] }
 0x22e   :  { %2090 = vmatpush.bf16.msrb.mxu2 %v3235_v25  ;;  %2118 = vmatpush.bf16.msra.mxu0 %v3183_v3  ;;  %v3135_v25 = vor.u32 %v3597_v16, %v3132_v17  ;;  %v3048_v3 = vld [vmem:[%s5457_s8 + $0xcc] sm:$0xf0]  ;;  %v3188_v16 = vld [vmem:[%s5457_s8 + $0x1e4] sm:$0xf0]  ;;  %v2967_v29 = vor.u32 %v3555_v27, %v2964_v28  ;;  %v3584_v27 = vld [vmem:[%s5457_s8 + $0xf4] sm:$0xf] }
 0x22f   :  { %v3191_v17 = vor.u32 %v3611_v15, %v3188_v16  ;;  %v3591_v15 = vld [vmem:[%s5457_s8 + $0x12c] sm:$0xf]  ;;  %v3112_v16 = vld [vmem:[%s5457_s8 + $0x144] sm:$0xf0]  ;;  %v3084_v28 = vld [vmem:[%s5457_s8 + $0x10c] sm:$0xf0] }
 0x230   :  { %2078 = vmatpush.bf16.msrb.mxu1 %v2983_v57  ;;  %v3628_v57 = vld [vmem:[%s5457_s8 + $0x250] sm:$0xf0] }
 0x231   :  { %2104 = vmatpush.bf16.msrb.mxu3 %v2987_v59  ;;  %v3625_v59 = vld [vmem:[%s5457_s8 + $0x23c] sm:$0xf]  ;;  %v3243_v61 = vor.u32 %v3628_v57, %v3242_v56  ;;  %v3168_v56 = vld [vmem:[%s5457_s8 + $0x1b4] sm:$0xf0] }
 0x232   :  { %2091 = vmatpush.bf16.msrb.mxu2 %v3207_v40  ;;  %v3074_v40 = vld [vmem:[%s5457_s8 + $0xe8] sm:$0xf]  ;;  %v3247_v62 = vor.u32 %v3625_v59, %v3244_v60 }
 0x233   :  { %v3075_v52 = vor.u32 %v3586_v41, %v3074_v40 }
 0x234   :  { %2079 = vmatpush.bf16.msrb.mxu1 %v2955_v7  ;;  %v3572_v7 = vld [vmem:[%s5457_s8 + $0x90] sm:$0xf0] }
 0x235   :  { %2105 = vmatpush.bf16.msrb.mxu3 %v2959_v10  ;;  %v3019_v8 = vor.u32 %v3572_v7, %v3018_v6  ;;  %v3020_v10 = vld [vmem:[%s5457_s8 + $0x94] sm:$0xf0]  ;;  %v3306_v6 = vld [vmem:[%s5457_s8 + $0x2b0] sm:$0xf]  ;;  %v3643_v7 = vld [vmem:[%s5457_s8 + $0x2c8] sm:$0xf0] }
 0x236   :  { %2092 = vmatpush.bf16.msrb.mxu2 %v3179_v51  ;;  %v3576_v51 = vld [vmem:[%s5457_s8 + $0xb4] sm:$0xf] }
 0x237   :  { %v3051_v43 = vor.u32 %v3576_v51, %v3048_v3 }
 0x238   :  { %2124 = vmatpush.bf16.msra.mxu1 %v3159_v11  ;;  %v3023_v11 = vor.u32 %v3569_v9, %v3020_v10  ;;  %v3308_v9 = vld [vmem:[%s5457_s8 + $0x2cc] sm:$0xf0] }
 0x23a   :  { %2137 = vmatpush.bf16.msra.mxu2 %v3383_v4  ;;  %v3618_v4 = vld [vmem:[%s5457_s8 + $0x204] sm:$0xf] }
 0x23c   :  { %2125 = vmatpush.bf16.msra.mxu1 %v3131_v24  ;;  %v2962_v24 = vld [vmem:[%s5457_s8 + $0x8] sm:$0xf] }
 0x23e   :  { %2138 = vmatpush.bf16.msra.mxu2 %v3355_v18  ;;  %v2990_v18 = vld [vmem:[%s5457_s8 + $0x40] sm:$0xf] }
 0x240   :  { %2126 = vmatpush.bf16.msra.mxu1 %v3103_v38  ;;  %v3661_v38 = vld [vmem:[%s5457_s8 + $0x35c] sm:$0xf] }
 0x242   :  { %2139 = vmatpush.bf16.msra.mxu2 %v3327_v31  ;;  %v1236_v31 = vld [vmem:[%s5463_s14] sm:$0x3] }
 0x243   :  { %v1238_v41 = vperm.slane %v1236_v31, 0 }
 0x244   :  { %2127 = vmatpush.bf16.msra.mxu1 %v3075_v52  ;;  %v3166_v52 = vld [vmem:[%s5457_s8 + $0x198] sm:$0xf] }
 0x2a0   :  { %v1214_v47 = vpop.f32.mrf.mxu1 }
 0x2a1   :  { %v1215_v53 = vadd.f32 %v3672_v33, %v1214_v47  ;;  %v3298_v33 = vld [vmem:[%s5457_s8 + $0x2a8] sm:$0xf]  ;;  %v3270_v47 = vld [vmem:[%s5457_s8 + $0x270] sm:$0xf] }
 0x2a2   :  { %v3299_v45 = vor.u32 %v3642_v34, %v3298_v33  ;;  %v3271_v54 = vor.u32 %v3635_v48, %v3270_v47  ;;  %v3390_v34 = vld [vmem:[%s5457_s8 + $0x358] sm:$0xf]  ;;  %v3657_v47 = vld [vmem:[%s5457_s8 + $0x338] sm:$0xf0]  ;;  %v3654_v48 = vld [vmem:[%s5457_s8 + $0x324] sm:$0xf] }
 0x2a3   :  { %v1218_v63 = vmax.f32 %v1215_v53, 0.0  ;;  %v3079_v53 = vor.u32 %v3583_v42, %v3076_v44  ;;  %v3391_v42 = vor.u32 %v3664_v36, %v3390_v34  ;;  %v3367_v60 = vor.u32 %v3654_v48, %v3364_v49  ;;  %v3626_v34 = vld [vmem:[%s5457_s8 + $0x244] sm:$0xf]  ;;  %v3619_v49 = vld [vmem:[%s5457_s8 + $0x20c] sm:$0xf] }
 0x2a4   :  { %2140 = vmatpush.bf16.msra.mxu2 %v3299_v45  ;;  %v3362_v45 = vld [vmem:[%s5457_s8 + $0x320] sm:$0xf]  ;;  %v3622_v48 = vld [vmem:[%s5457_s8 + $0x220] sm:$0xf0] }
 0x2a5   :  { %v1219_v2 = vpack.c.bf16 %v1218_v63, %v1218_v63  ;;  %v3046_v63 = vld [vmem:[%s5457_s8 + $0xb0] sm:$0xf]  ;;  %v3363_v59 = vor.u32 %v3657_v47, %v3362_v45  ;;  %v3222_v47 = vld [vmem:[%s5457_s8 + $0x208] sm:$0xf] }
 0x2a6   :  { %v3047_v1 = vor.u32 %v3579_v0, %v3046_v63  ;;  %v3647_v0 = vld [vmem:[%s5457_s8 + $0x2ec] sm:$0xf] }
 0x2a7   :  { %1330 = vmatmul.bf16.vlgmr.msra.gmra.mxu3 %v1219_v2  ;;  %1343 = vmatmul.bf16.vlgmr.msrb.gmra.mxu0 %v1219_v2  ;;  %v3215_v2 = vor.u32 %v3621_v37, %v3214_v30  ;;  %v3601_v37 = vld [vmem:[%s5457_s8 + $0x178] sm:$0xf0] }
 0x2a8   :  { %v1216_v14 = vpop.f32.mrf.mxu1  ;;  %2163 = vmatpush.bf16.msrb.mxu0 %v3387_v58  ;;  %2150 = vmatpush.bf16.msra.mxu3 %v3163_v12  ;;  %v3216_v58 = vld [vmem:[%s5457_s8 + $0x21c] sm:$0xf0]  ;;  %v3186_v12 = vld [vmem:[%s5457_s8 + $0x1c8] sm:$0xf] }
 0x2a9   :  { %2141 = vmatpush.bf16.msra.mxu2 %v3271_v54  ;;  %2128 = vmatpush.bf16.msra.mxu1 %v3047_v1  ;;  %v3219_v5 = vor.u32 %v3618_v4, %v3216_v58  ;;  %v3187_v14 = vor.u32 %v3614_v13, %v3186_v12  ;;  %v3608_v54 = vld [vmem:[%s5457_s8 + $0x1b0] sm:$0xf0]  ;;  %v3336_v1 = vld [vmem:[%s5457_s8 + $0x304] sm:$0xf0]  ;;  %v3140_v4 = vld [vmem:[%s5457_s8 + $0x17c] sm:$0xf0] }
 0x2aa   :  { %v3167_v51 = vor.u32 %v3608_v54, %v3166_v52  ;;  %v3110_v13 = vld [vmem:[%s5457_s8 + $0x128] sm:$0xf]  ;;  %v3026_v54 = vld [vmem:[%s5457_s8 + $0x80] sm:$0xf] }
 0x2ac   :  { %2164 = vmatpush.bf16.msrb.mxu0 %v3359_v19  ;;  %2151 = vmatpush.bf16.msra.mxu3 %v3135_v25  ;;  %v3565_v19 = vld [vmem:[%s5457_s8 + $0x58] sm:$0xf0]  ;;  %v3558_v25 = vld [vmem:[%s5457_s8 + $0x20] sm:$0xf0] }
 0x2ad   :  { %2142 = vmatpush.bf16.msra.mxu2 %v3243_v61  ;;  %2129 = vmatpush.bf16.msra.mxu1 %v3019_v8  ;;  %v2991_v20 = vor.u32 %v3565_v19, %v2990_v18  ;;  %v2963_v26 = vor.u32 %v3558_v25, %v2962_v24  ;;  %v3334_v61 = vld [vmem:[%s5457_s8 + $0x2e8] sm:$0xf]  ;;  %v3640_v8 = vld [vmem:[%s5457_s8 + $0x2b4] sm:$0xf]  ;;  %v3278_v19 = vld [vmem:[%s5457_s8 + $0x278] sm:$0xf]  ;;  %v3115_v24 = vor.u32 %v3591_v15, %v3112_v16 }
 0x2ae   :  { %v3311_v18 = vor.u32 %v3640_v8, %v3308_v9  ;;  %v3082_v25 = vld [vmem:[%s5457_s8 + $0xf0] sm:$0xf]  ;;  %v3174_v16 = vld [vmem:[%s5457_s8 + $0x1a0] sm:$0xf] }
 0x2af   :  { %v2972_v15 = vld [vmem:[%s5457_s8 + $0x2c] sm:$0xf0] }
 0x2b0   :  { %2165 = vmatpush.bf16.msrb.mxu0 %v3331_v32  ;;  %2152 = vmatpush.bf16.msra.mxu3 %v3107_v39  ;;  %v1239_v32 = vperm.slane %v1236_v31, 1  ;;  %v3392_v39 = vld [vmem:[%s5457_s8 + $0x374] sm:$0xf0]  ;;  %v3283_v31 = vor.u32 %v3633_v21, %v3280_v22  ;;  %v3342_v21 = vld [vmem:[%s5457_s8 + $0x2f0] sm:$0xf] }
 0x2b1   :  { %2143 = vmatpush.bf16.msra.mxu2 %v3215_v2  ;;  %2130 = vmatpush.bf16.msra.mxu1 %v2991_v20  ;;  %v3395_v44 = vor.u32 %v3661_v38, %v3392_v39  ;;  %v3598_v2 = vld [vmem:[%s5457_s8 + $0x164] sm:$0xf]  ;;  %v3636_v20 = vld [vmem:[%s5457_s8 + $0x290] sm:$0xf0]  ;;  %v3087_v38 = vor.u32 %v3584_v27, %v3084_v28  ;;  %v3054_v39 = vld [vmem:[%s5457_s8 + $0xb8] sm:$0xf] }
 0x2b2   :  { %v3143_v12 = vor.u32 %v3598_v2, %v3140_v4  ;;  %v3566_v2 = vld [vmem:[%s5457_s8 + $0x60] sm:$0xf0]  ;;  %v3563_v4 = vld [vmem:[%s5457_s8 + $0x4c] sm:$0xf]  ;;  %v3314_v27 = vld [vmem:[%s5457_s8 + $0x2b8] sm:$0xf] }
 0x2b3   :  { %v3651_v22 = vld [vmem:[%s5457_s8 + $0x308] sm:$0xf0]  ;;  %v3644_v28 = vld [vmem:[%s5457_s8 + $0x2d0] sm:$0xf0] }
 0x2b4   :  { %2166 = vmatpush.bf16.msrb.mxu0 %v3303_v46  ;;  %2153 = vmatpush.bf16.msra.mxu3 %v3079_v53 }
 0x2b5   :  { %2144 = vmatpush.bf16.msra.mxu2 %v3187_v14  ;;  %2131 = vmatpush.bf16.msra.mxu1 %v2963_v26  ;;  %v3594_v14 = vld [vmem:[%s5457_s8 + $0x140] sm:$0xf0]  ;;  %v3587_v26 = vld [vmem:[%s5457_s8 + $0x108] sm:$0xf0] }
 0x2b6   :  { %v3083_v36 = vor.u32 %v3587_v26, %v3082_v25  ;;  %v3602_v25 = vld [vmem:[%s5457_s8 + $0x180] sm:$0xf0]  ;;  %v3343_v26 = vor.u32 %v3651_v22, %v3342_v21 }
 0x2b8   :  { %2167 = vmatpush.bf16.msrb.mxu0 %v3275_v55  ;;  %2154 = vmatpush.bf16.msra.mxu3 %v3051_v43  ;;  %v3605_v55 = vld [vmem:[%s5457_s8 + $0x19c] sm:$0xf]  ;;  %v3138_v43 = vld [vmem:[%s5457_s8 + $0x160] sm:$0xf] }
 0x2b9   :  { %v3171_v3 = vor.u32 %v3605_v55, %v3168_v56  ;;  %v3573_v55 = vld [vmem:[%s5457_s8 + $0x98] sm:$0xf0]  ;;  %v3570_v56 = vld [vmem:[%s5457_s8 + $0x84] sm:$0xf] }
 0x2bc   :  { %2168 = vmatpush.bf16.msrb.mxu0 %v3247_v62  ;;  %2155 = vmatpush.bf16.msra.mxu3 %v3023_v11  ;;  %v3650_v62 = vld [vmem:[%s5457_s8 + $0x300] sm:$0xf0]  ;;  %v3139_v11 = vor.u32 %v3601_v37, %v3138_v43  ;;  %v3665_v43 = vld [vmem:[%s5457_s8 + $0x378] sm:$0xf0]  ;;  %v2998_v37 = vld [vmem:[%s5457_s8 + $0x48] sm:$0xf] }
 0x2bd   :  { %v3335_v58 = vor.u32 %v3650_v62, %v3334_v61  ;;  %v3194_v61 = vld [vmem:[%s5457_s8 + $0x1d0] sm:$0xf]  ;;  %v3615_v62 = vld [vmem:[%s5457_s8 + $0x1e8] sm:$0xf0]  ;;  %v2999_v8 = vor.u32 %v3566_v2, %v2998_v37 }
 0x2c0   :  { %2169 = vmatpush.bf16.msrb.mxu0 %v3219_v5  ;;  %2156 = vmatpush.bf16.msra.mxu3 %v2995_v23  ;;  %v3339_v5 = vor.u32 %v3647_v0, %v3336_v1  ;;  %v3111_v23 = vor.u32 %v3594_v14, %v3110_v13  ;;  %v3196_v0 = vld [vmem:[%s5457_s8 + $0x1ec] sm:$0xf0]  ;;  %v3027_v1 = vor.u32 %v3573_v55, %v3026_v54  ;;  %v3559_v13 = vld [vmem:[%s5457_s8 + $0x28] sm:$0xf0]  ;;  %v3556_v14 = vld [vmem:[%s5457_s8 + $0x14] sm:$0xf] }
 0x2c1   :  { %v3574_v54 = vld [vmem:[%s5457_s8 + $0xa0] sm:$0xf0] }
 0x2c4   :  { %2170 = vmatpush.bf16.msrb.mxu0 %v3191_v17  ;;  %2157 = vmatpush.bf16.msra.mxu3 %v2967_v29  ;;  %v3307_v17 = vor.u32 %v3643_v7, %v3306_v6  ;;  %v3279_v29 = vor.u32 %v3636_v20, %v3278_v19  ;;  %v2975_v20 = vor.u32 %v3556_v14, %v2972_v15 }
 0x324   :  { %v1344_v33 = vpop.f32.mrf.mxu0 }
 0x325   :  { %v1345_v35 = vadd.f32 %v1344_v33, %v1239_v32  ;;  %v3250_v32 = vld [vmem:[%s5457_s8 + $0x240] sm:$0xf]  ;;  %v3629_v33 = vld [vmem:[%s5457_s8 + $0x258] sm:$0xf0] }
 0x327   :  { %v1349_v40 = vmax.f32 %v1345_v35, 0.0  ;;  %v3252_v35 = vld [vmem:[%s5457_s8 + $0x25c] sm:$0xf0] }
 0x328   :  { %v3255_v45 = vor.u32 %v3626_v34, %v3252_v35  ;;  %v3286_v34 = vld [vmem:[%s5457_s8 + $0x280] sm:$0xf]  ;;  %v3637_v35 = vld [vmem:[%s5457_s8 + $0x298] sm:$0xf0] }
 0x329   :  { %v5137_v46 = vpack.c.bf16 %v1349_v40, %v1349_v40  ;;  %v3580_v40 = vld [vmem:[%s5457_s8 + $0xd0] sm:$0xf0] }
 0x32a   :  { %v1331_v50 = vpop.f32.mrf.mxu3  ;;  %v3055_v52 = vor.u32 %v3580_v40, %v3054_v39  ;;  %v3588_v39 = vld [vmem:[%s5457_s8 + $0x110] sm:$0xf0]  ;;  %v3287_v40 = vor.u32 %v3637_v35, %v3286_v34 }
 0x32b   :  { %v1332_v53 = vadd.f32 %v1331_v50, %v1238_v41  ;;  %2093 = vmatmul.bf16.vlgmr.msrb.gmra.mxu2 %v5137_v46  ;;  %2119 = vmatmul.bf16.vlgmr.msra.gmra.mxu0 %v5137_v46  ;;  %v3577_v41 = vld [vmem:[%s5457_s8 + $0xbc] sm:$0xf]  ;;  %v3224_v50 = vld [vmem:[%s5457_s8 + $0x224] sm:$0xf0] }
 0x32c   :  { %2189 = vmatpush.bf16.msrb.mxu2 %v3391_v42  ;;  %v1346_v57 = vpop.f32.mrf.mxu0  ;;  %2215 = vmatpush.bf16.msra.mxu0 %v3395_v44  ;;  %v3056_v42 = vld [vmem:[%s5457_s8 + $0xd4] sm:$0xf0]  ;;  %v3251_v44 = vor.u32 %v3629_v33, %v3250_v32  ;;  %v3595_v32 = vld [vmem:[%s5457_s8 + $0x148] sm:$0xf0]  ;;  %v3315_v33 = vor.u32 %v3644_v28, %v3314_v27 }
 0x32d   :  { %v1348_v63 = vmax.f32 %v1332_v53, 0.0  ;;  %v3059_v53 = vor.u32 %v3577_v41, %v3056_v42  ;;  %v3028_v57 = vld [vmem:[%s5457_s8 + $0x9c] sm:$0xf0]  ;;  %v3258_v41 = vld [vmem:[%s5457_s8 + $0x248] sm:$0xf] }
 0x32e   :  { %v3630_v42 = vld [vmem:[%s5457_s8 + $0x260] sm:$0xf0] }
 0x32f   :  { %v5177_v30 = vpack.c.bf16 %v1348_v63, %v1348_v63  ;;  %v3612_v63 = vld [vmem:[%s5457_s8 + $0x1d4] sm:$0xf] }
 0x330   :  { %2190 = vmatpush.bf16.msrb.mxu2 %v3363_v59  ;;  %2216 = vmatpush.bf16.msra.mxu0 %v3367_v60  ;;  %v3223_v59 = vor.u32 %v3622_v48, %v3222_v47  ;;  %v3227_v60 = vor.u32 %v3619_v49, %v3224_v50  ;;  %v3199_v6 = vor.u32 %v3612_v63, %v3196_v0  ;;  %v3581_v47 = vld [vmem:[%s5457_s8 + $0xd8] sm:$0xf0]  ;;  %v3230_v49 = vld [vmem:[%s5457_s8 + $0x210] sm:$0xf]  ;;  %v3623_v50 = vld [vmem:[%s5457_s8 + $0x228] sm:$0xf0] }
 0x331   :  { %2080 = vmatmul.bf16.vlgmr.msrb.gmra.mxu1 %v5177_v30  ;;  %2106 = vmatmul.bf16.vlgmr.msrb.gmra.mxu3 %v5177_v30  ;;  %v3259_v48 = vor.u32 %v3630_v42, %v3258_v41  ;;  %v3231_v55 = vor.u32 %v3623_v50, %v3230_v49  ;;  %v2978_v0 = vld [vmem:[%s5457_s8 + $0x18] sm:$0xf] }
 0x332   :  { %2176 = vmatpush.bf16.msrb.mxu1 %v3167_v51  ;;  %v1333_v10 = vpop.f32.mrf.mxu3  ;;  %2202 = vmatpush.bf16.msrb.mxu3 %v3171_v3  ;;  %v3031_v51 = vor.u32 %v3570_v56, %v3028_v57  ;;  %v3398_v3 = vld [vmem:[%s5457_s8 + $0x360] sm:$0xf]  ;;  %v3202_v56 = vld [vmem:[%s5457_s8 + $0x1d8] sm:$0xf]  ;;  %v3616_v57 = vld [vmem:[%s5457_s8 + $0x1f0] sm:$0xf0] }
 0x333   :  { %v3399_v7 = vor.u32 %v3665_v43, %v3398_v3  ;;  %v3370_v10 = vld [vmem:[%s5457_s8 + $0x328] sm:$0xf] }
 0x334   :  { %2191 = vmatpush.bf16.msrb.mxu2 %v3335_v58  ;;  %2217 = vmatpush.bf16.msra.mxu0 %v3339_v5  ;;  %v3000_v58 = vld [vmem:[%s5457_s8 + $0x64] sm:$0xf0]  ;;  %v3195_v5 = vor.u32 %v3615_v62, %v3194_v61  ;;  %v3567_v61 = vld [vmem:[%s5457_s8 + $0x68] sm:$0xf0]  ;;  %v3203_v62 = vor.u32 %v3616_v57, %v3202_v56 }
 0x335   :  { %v3003_v9 = vor.u32 %v3563_v4, %v3000_v58 }
 0x336   :  { %2177 = vmatpush.bf16.msrb.mxu1 %v3139_v11  ;;  %2203 = vmatpush.bf16.msrb.mxu3 %v3143_v12  ;;  %v3658_v11 = vld [vmem:[%s5457_s8 + $0x340] sm:$0xf0]  ;;  %v2970_v12 = vld [vmem:[%s5457_s8 + $0x10] sm:$0xf] }
 0x337   :  { %v2971_v19 = vor.u32 %v3559_v13, %v2970_v12 }
 0x338   :  { %2192 = vmatpush.bf16.msrb.mxu2 %v3307_v17  ;;  %2218 = vmatpush.bf16.msra.mxu0 %v3311_v18  ;;  %v3609_v17 = vld [vmem:[%s5457_s8 + $0x1b8] sm:$0xf0]  ;;  %v3371_v18 = vor.u32 %v3658_v11, %v3370_v10 }
 0x33a   :  { %2178 = vmatpush.bf16.msrb.mxu1 %v3111_v23  ;;  %2204 = vmatpush.bf16.msrb.mxu3 %v3115_v24  ;;  %v3175_v23 = vor.u32 %v3609_v17, %v3174_v16  ;;  %v3146_v24 = vld [vmem:[%s5457_s8 + $0x168] sm:$0xf] }
 0x33b   :  { %2145 = vmatmul.bf16.vlgmr.msra.gmra.mxu2 %v5137_v46  ;;  %2171 = vmatmul.bf16.vlgmr.msrb.gmra.mxu0 %v5137_v46 }
 0x33c   :  { %2193 = vmatpush.bf16.msrb.mxu2 %v3279_v29  ;;  %2219 = vmatpush.bf16.msra.mxu0 %v3283_v31  ;;  %v3147_v29 = vor.u32 %v3602_v25, %v3146_v24  ;;  %v3118_v31 = vld [vmem:[%s5457_s8 + $0x130] sm:$0xf] }
 0x33e   :  { %2179 = vmatpush.bf16.msrb.mxu1 %v3083_v36  ;;  %2205 = vmatpush.bf16.msrb.mxu3 %v3087_v38  ;;  %v3119_v36 = vor.u32 %v3595_v32, %v3118_v31  ;;  %v3090_v38 = vld [vmem:[%s5457_s8 + $0xf8] sm:$0xf] }
 0x340   :  { %2194 = vmatpush.bf16.msrb.mxu2 %v3251_v44  ;;  %2220 = vmatpush.bf16.msra.mxu0 %v3255_v45  ;;  %v3091_v44 = vor.u32 %v3588_v39, %v3090_v38  ;;  %v3062_v45 = vld [vmem:[%s5457_s8 + $0xc0] sm:$0xf] }
 0x341   :  { %2132 = vmatmul.bf16.vlgmr.msra.gmra.mxu1 %v5177_v30  ;;  %2158 = vmatmul.bf16.vlgmr.msra.gmra.mxu3 %v5177_v30 }
 0x342   :  { %2180 = vmatpush.bf16.msrb.mxu1 %v3055_v52  ;;  %2206 = vmatpush.bf16.msrb.mxu3 %v3059_v53  ;;  %v3063_v52 = vor.u32 %v3581_v47, %v3062_v45  ;;  %v3034_v53 = vld [vmem:[%s5457_s8 + $0x88] sm:$0xf] }
 0x344   :  { %2195 = vmatpush.bf16.msrb.mxu2 %v3223_v59  ;;  %2221 = vmatpush.bf16.msra.mxu0 %v3227_v60  ;;  %v3035_v59 = vor.u32 %v3574_v54, %v3034_v53  ;;  %v3006_v60 = vld [vmem:[%s5457_s8 + $0x50] sm:$0xf] }
 0x345   :  { %v3007_v63 = vor.u32 %v3567_v61, %v3006_v60 }
 0x346   :  { %2181 = vmatpush.bf16.msrb.mxu1 %v3027_v1  ;;  %2207 = vmatpush.bf16.msrb.mxu3 %v3031_v51  ;;  %v3560_v1 = vld [vmem:[%s5457_s8 + $0x30] sm:$0xf0] }
 0x347   :  { %v2979_v51 = vor.u32 %v3560_v1, %v2978_v0 }
 0x348   :  { %2196 = vmatpush.bf16.msrb.mxu2 %v3195_v5  ;;  %2222 = vmatpush.bf16.msra.mxu0 %v3199_v6 }
 0x34a   :  { %2182 = vmatpush.bf16.msrb.mxu1 %v2999_v8  ;;  %2208 = vmatpush.bf16.msrb.mxu3 %v3003_v9 }
 0x34b   :  { %2197 = vmatmul.bf16.vlgmr.msrb.gmra.mxu2 %v5137_v46  ;;  %2223 = vmatmul.bf16.vlgmr.msra.gmra.mxu0 %v5137_v46 }
 0x34c   :  { %2241 = vmatpush.bf16.msra.mxu2 %v3399_v7 }
 0x34e   :  { %2183 = vmatpush.bf16.msrb.mxu1 %v2971_v19  ;;  %2209 = vmatpush.bf16.msrb.mxu3 %v2975_v20 }
 0x350   :  { %2242 = vmatpush.bf16.msra.mxu2 %v3371_v18 }
 0x351   :  { %2184 = vmatmul.bf16.vlgmr.msrb.gmra.mxu1 %v5177_v30  ;;  %2210 = vmatmul.bf16.vlgmr.msrb.gmra.mxu3 %v5177_v30 }
 0x352   :  { %2228 = vmatpush.bf16.msra.mxu1 %v3175_v23 }
 0x354   :  { %2243 = vmatpush.bf16.msra.mxu2 %v3343_v26 }
 0x356   :  { %2229 = vmatpush.bf16.msra.mxu1 %v3147_v29 }
 0x358   :  { %2244 = vmatpush.bf16.msra.mxu2 %v3315_v33 }
 0x35a   :  { %2230 = vmatpush.bf16.msra.mxu1 %v3119_v36 }
 0x35c   :  { %2245 = vmatpush.bf16.msra.mxu2 %v3287_v40 }
 0x35e   :  { %2231 = vmatpush.bf16.msra.mxu1 %v3091_v44 }
 0x360   :  { %2246 = vmatpush.bf16.msra.mxu2 %v3259_v48 }
 0x362   :  { %2232 = vmatpush.bf16.msra.mxu1 %v3063_v52 }
 0x364   :  { %2247 = vmatpush.bf16.msra.mxu2 %v3231_v55 }
 0x366   :  { %2233 = vmatpush.bf16.msra.mxu1 %v3035_v59 }
 0x368   :  { %2248 = vmatpush.bf16.msra.mxu2 %v3203_v62 }
 0x36a   :  { %2234 = vmatpush.bf16.msra.mxu1 %v3007_v63 }
 0x36b   :  { %2249 = vmatmul.bf16.vlgmr.msra.gmra.mxu2 %v5137_v46 }
 0x36e   :  { %2235 = vmatpush.bf16.msra.mxu1 %v2979_v51 }
 0x371   :  { %2236 = vmatmul.bf16.vlgmr.msra.gmra.mxu1 %v5177_v30  ;;  %v5437_v30 = vld [vmem:[%s5464_s15] sm:$0x7f]  ;;  %s3781_s15 = smov [#allocation2]  }
 0x372   :  { %v1482_v3 = vperm.slane %v5437_v30, 0  ;;  %v1483_v5 = vperm.slane %v5437_v30, 1  ;;  %v1484_v17 = vperm.slane %v5437_v30, 2  ;;  %v1485_v26 = vperm.slane %v5437_v30, 3  ;;  %s2319_s17 = sshll.u32 %s3781_s15, 4  ;;  %s2320_s17 = int_to_ptr.vmem [resolvable:$true] %s2319_s17 }
 0x373   :  { %v1486_v44 = vperm.slane %v5437_v30, 4  ;;  %v1487_v59 = vperm.slane %v5437_v30, 5 }
 0x3a8   :  { %v2120_v46 = vpop.f32.mrf.mxu0 }
 0x3ae   :  { %v2081_v43 = vpop.f32.mrf.mxu1  ;;  %v2094_v37 = vpop.f32.mrf.mxu2 }
 0x3af   :  { %v2082_v2 = vadd.f32 %v2081_v43, %v1482_v3 }
 0x3b0   :  { %v2122_v4 = vpop.f32.mrf.mxu0 }
 0x3b1   :  { %v2095_v58 = vadd.f32 %v2094_v37, %v2082_v2 }
 0x3b3   :  { %v3400_v6 = vclamps-f32 %v2095_v58, 30.0 }
 0x3b4   :  { %v2107_v7 = vpop.f32.mrf.mxu3 }
 0x3b5   :  { %v2268_v8 = vsub.f32 0.0, %v3400_v6  ;;  %v2108_v9 = vadd.f32 %v2107_v7, %v1483_v5 }
 0x3b6   :  { %v2083_v10 = vpop.f32.mrf.mxu1  ;;  %v2096_v11 = vpop.f32.mrf.mxu2 }
 0x3b7   :  { %v2275_v12 = vmul.f32 1.442695, %v2268_v8  ;;  %v2121_v13 = vadd.f32 %v2120_v46, %v2108_v9 }
 0x3b8   :  { %v2172_v14 = vpop.f32.mrf.mxu0 }
 0x3b9   :  { %v3401_v15 = vclamps-f32 %v2121_v13, 30.0  ;;  %3675 = vpow2.f32 %v2275_v12  ;;  %v1488_v13 = vperm.slane %v5437_v30, 6 }
 0x3bb   :  { %v2269_v16 = vsub.f32 0.0, %v3401_v15 }
 0x3bc   :  { %v2109_v18 = vpop.f32.mrf.mxu3 }
 0x3bd   :  { %v2277_v19 = vmul.f32 1.442695, %v2269_v16 }
 0x3be   :  { %v2133_v20 = vpop.f32.mrf.mxu1  ;;  %v2146_v21 = vpop.f32.mrf.mxu2 }
 0x3bf   :  { %3677 = vpow2.f32 %v2277_v19  ;;  %v2134_v22 = vadd.f32 %v2133_v20, %v1484_v17  ;;  %v3676_v23 = vpop.eup %3675 }
 0x3c0   :  { %v2174_v24 = vpop.f32.mrf.mxu0  ;;  %v2289_v27 = vadd.f32 1.0, %v3676_v23 }
 0x3c1   :  { %v2147_v25 = vadd.f32 %v2146_v21, %v2134_v22 }
 0x3c2   :  { %3679 = vrcp.f32 %v2289_v27 }
 0x3c3   :  { %v3402_v28 = vclamps-f32 %v2147_v25, 30.0 }
 0x3c4   :  { %v2159_v29 = vpop.f32.mrf.mxu3 }
 0x3c5   :  { %v3678_v31 = vpop.eup %3677  ;;  %v2270_v32 = vsub.f32 0.0, %v3402_v28  ;;  %v2160_v33 = vadd.f32 %v2159_v29, %v1485_v26 }
 0x3c6   :  { %v2290_v34 = vadd.f32 1.0, %v3678_v31  ;;  %v2135_v35 = vpop.f32.mrf.mxu1  ;;  %v2148_v36 = vpop.f32.mrf.mxu2 }
 0x3c7   :  { %v2279_v38 = vmul.f32 1.442695, %v2270_v32  ;;  %v2173_v39 = vadd.f32 %v2172_v14, %v2160_v33 }
 0x3c8   :  { %3681 = vrcp.f32 %v2290_v34  ;;  %v2224_v40 = vpop.f32.mrf.mxu0  ;;  %v3680_v47 = vpop.eup %3679 }
 0x3c9   :  { %v3403_v41 = vclamps-f32 %v2173_v39, 30.0  ;;  %3683 = vpow2.f32 %v2279_v38 }
 0x3cb   :  { %v2271_v42 = vsub.f32 0.0, %v3403_v41 }
 0x3cc   :  { %v2161_v45 = vpop.f32.mrf.mxu3 }
 0x3cd   :  { %v2281_v48 = vmul.f32 1.442695, %v2271_v42 }
 0x3ce   :  { %v3682_v49 = vpop.eup %3681  ;;  %v2185_v50 = vpop.f32.mrf.mxu1 }
 0x3cf   :  { %v2198_v52 = vpop.f32.mrf.mxu2  ;;  %3685 = vpow2.f32 %v2281_v48  ;;  %v2186_v53 = vadd.f32 %v2185_v50, %v1486_v44  ;;  %v2303_v54 = vpack.c.bf16 %v3682_v49, %v3680_v47  ;;  %v3684_v55 = vpop.eup %3683 }
 0x3d0   :  { %v2226_v56 = vpop.f32.mrf.mxu0  ;;  %v2291_v60 = vadd.f32 1.0, %v3684_v55 }
 0x3d1   :  { %v2199_v57 = vadd.f32 %v2198_v52, %v2186_v53  ;;  %2307 = vst [vmem:[#allocation2] sm:$0xff] %v2303_v54 }
 0x3d2   :  { %3687 = vrcp.f32 %v2291_v60 }
 0x3d3   :  { %v3404_v61 = vclamps-f32 %v2199_v57, 30.0 }
 0x3d4   :  { %v2211_v0 = vpop.f32.mrf.mxu3 }
 0x3d5   :  { %v3686_v62 = vpop.eup %3685  ;;  %v2272_v63 = vsub.f32 0.0, %v3404_v61  ;;  %v2212_v51 = vadd.f32 %v2211_v0, %v1487_v59 }
 0x3d6   :  { %v2292_v1 = vadd.f32 1.0, %v3686_v62  ;;  %v2187_v46 = vpop.f32.mrf.mxu1 }
 0x3d7   :  { %v2200_v3 = vpop.f32.mrf.mxu2  ;;  %v2283_v43 = vmul.f32 1.442695, %v2272_v63  ;;  %v2225_v37 = vadd.f32 %v2224_v40, %v2212_v51 }
 0x3d8   :  { %3689 = vrcp.f32 %v2292_v1  ;;  %v3688_v58 = vpop.eup %3687 }
 0x3d9   :  { %v3405_v2 = vclamps-f32 %v2225_v37, 30.0  ;;  %3691 = vpow2.f32 %v2283_v43 }
 0x3db   :  { %v2273_v4 = vsub.f32 0.0, %v3405_v2 }
 0x3dc   :  { %v2213_v5 = vpop.f32.mrf.mxu3 }
 0x3dd   :  { %v2285_v7 = vmul.f32 1.442695, %v2273_v4 }
 0x3de   :  { %v3690_v6 = vpop.eup %3689 }
 0x3df   :  { %v2304_v8 = vpack.c.bf16 %v3690_v6, %v3688_v58  ;;  %3693 = vpow2.f32 %v2285_v7  ;;  %v3692_v9 = vpop.eup %3691 }
 0x3e0   :  { %v2293_v10 = vadd.f32 1.0, %v3692_v9 }
 0x3e1   :  { %2308 = vst [vmem:[#allocation2 + $0x8] sm:$0xff] %v2304_v8 }
 0x3e2   :  { %3695 = vrcp.f32 %v2293_v10 }
 0x3e5   :  { %v3694_v11 = vpop.eup %3693 }
 0x3e6   :  { %v2294_v12 = vadd.f32 1.0, %v3694_v11 }
 0x3e8   :  { %3697 = vrcp.f32 %v2294_v12  ;;  %v3696_v17 = vpop.eup %3695 }
 0x3ee   :  { %v2237_v14 = vpop.f32.mrf.mxu1  ;;  %v2250_v15 = vpop.f32.mrf.mxu2 }
 0x3ef   :  { %v2238_v16 = vadd.f32 %v2237_v14, %v1488_v13  ;;  %v3698_v19 = vpop.eup %3697 }
 0x3f0   :  { %v2305_v21 = vpack.c.bf16 %v3698_v19, %v3696_v17 }
 0x3f1   :  { %v2251_v18 = vadd.f32 %v2250_v15, %v2238_v16 }
 0x3f2   :  { %2309 = vst [vmem:[#allocation2 + $0x10] sm:$0xff] %v2305_v21 }
 0x3f3   :  { %v3406_v20 = vclamps-f32 %v2251_v18, 30.0 }
 0x3f5   :  { %v2274_v22 = vsub.f32 0.0, %v3406_v20 }
 0x3f6   :  { %v2239_v23 = vpop.f32.mrf.mxu1  ;;  %v2252_v24 = vpop.f32.mrf.mxu2 }
 0x3f7   :  { %v2287_v25 = vmul.f32 1.442695, %v2274_v22 }
 0x3f9   :  { %3699 = vpow2.f32 %v2287_v25 }
 0x3ff   :  { %v3700_v26 = vpop.eup %3699 }
 0x400   :  { %v2295_v27 = vadd.f32 1.0, %v3700_v26 }
 0x402   :  { %3701 = vrcp.f32 %v2295_v27 }
 0x408   :  { %v3702_v30 = vpop.eup %3701 }
 0x409   :  { %v2306_v28 = vpack.c.bf16 %v3702_v30, %v3702_v30 }
 0x40b   :  { %2311 = vst.msk [vmem:[#allocation2 + $0x18] sm:$0xf] %vm2310_vm3, %v2306_v28 }
 0x40c   :  { %2324 = dma.vmem_to_hbm [thread:$0]  %s2320_s17, 448, %s2322_s23, [#allocation3]  }
 0x40d   :  { %3775 = dma.done.wait [#allocation3], 448  }
 0x40e   :  { %3776 = vsyncadd [#allocation3], 4294966848 }
 0x40f   :  { %3777 = dma.done.wait [#allocation5], 256  }
 0x410   :  { %3778 = vsyncadd [#allocation5], 4294967040 }
 0x411   :  { %2359 = vsyncpa [#allocation3], 1 }
 0x412   :  { %2360 = vsyncpa [#allocation5], 1 }

</bundles_post_ra>
